<compile_context>
chip_gen: v5e
topology: v5e:2x2
jax: 0.10.0
libtpu: 0.0.40
codegen_flags: <defaults>
</compile_context>

<pallas_src>
import functools

import numpy as np
import jax
import jax.numpy as jnp
from jax.experimental import pallas as pl
from jax.experimental.pallas import tpu as pltpu

# ---- model dimensions (match the PyTorch script) -----------------------------
B = 2                    # test batch (kernel tiles any batch size)
T, D = 8, 8              # trajectory (B, T, D) -> flatten(1) -> (B, 64)
INPUT_DIM = T * D        # 64
HIDDEN_DIM = 512         # hidden_dim = 512 in the script
OUTPUT_DIM = INPUT_DIM   # output_dim == input_dim so .view(-1, input_dim) holds
EMB_DIM = 32             # PositionalEncoding(32)
HALF_DIM = EMB_DIM // 2  # 16

K1 = 128                          # padded layer-1 width: 64 x | 16 sin | 16 cos | 1 bias | 31 zero
BIAS_LANE = INPUT_DIM + EMB_DIM   # 96 — constant-1.0 lane carrying b1 through the MXU
OUT_PAD = 128                     # padded (lane-dense) output width

_PE_SCALE = float(np.log(10000.0) / (HALF_DIM - 1))


def denoise_kernel(x_ref, w1_ref, w2_ref, b2_ref, w3_ref, b3_ref, o_ref):
    """3-layer MLP for one batch tile (weights resident in VMEM).

    x_ref already holds bf16 concat([x, sin, cos, 1.0, 0-pad]) across 128
    lanes, and b1 is folded into row BIAS_LANE of w1_ref, so layer 1 is a
    single MXU pass with no epilogue bias add.
    """
    # --- Linear(input_dim+32 -> H) (+ folded bias) + ReLU, one MXU pass.
    h1 = jnp.dot(x_ref[...], w1_ref[...], preferred_element_type=jnp.float32)
    h1 = jnp.maximum(h1.astype(jnp.bfloat16), 0)        # ReLU commutes with rounding

    # --- Linear(H -> H) + bias (f32) + ReLU (bf16 epilogue).
    h2 = jnp.dot(h1, w2_ref[...], preferred_element_type=jnp.float32)
    h2 = jnp.maximum((h2 + b2_ref[...]).astype(jnp.bfloat16), 0)

    # --- Linear(H -> output_dim), lane-dense (output padded to 128 lanes).
    out = jnp.dot(h2, w3_ref[...], preferred_element_type=jnp.float32) + b3_ref[...]
    o_ref[...] = out.astype(o_ref.dtype)


def _choose_tile_m(b):
    """Adaptive batch tile (bf16 sublane granularity = 16 rows).

    * tiny batch  : one minimal 16-row tile (no 128-row dead padding),
    * mid batch   : split into >=2 grid steps so "parallel" can use both
                    TensorCores on v7x,
    * large batch : 512-row tiles to amortize per-grid-step overhead.
    """
    b16 = pl.cdiv(b, 16) * 16
    if b16 <= 16:
        return 16
    if b16 <= 1024:
        half = pl.cdiv(pl.cdiv(b16, 2), 16) * 16
        return int(min(half, 512))
    return 512


@functools.partial(jax.jit, static_argnames=())
def trajectory_denoising_forward(x, timestep, kparams):
    """x: (B, T, D) float32; timestep: (B,) int/float; kparams: packed params."""
    w1, w2, b2, w3, b3 = kparams
    b = x.shape[0]
    xf = x.reshape(b, -1).astype(jnp.float32)            # flatten(1)
    input_dim = xf.shape[1]

    # PositionalEncoding(32) computed in the wrapper (fuses into the x_pad
    # scatter) + a constant 1.0 lane so b1 rides along as a row of w1_pad.
    freqs = jnp.exp(jnp.arange(HALF_DIM, dtype=jnp.float32) * -_PE_SCALE)
    ang = timestep.astype(jnp.float32)[:, None] * freqs
    feat = jnp.concatenate(
        [xf, jnp.sin(ang), jnp.cos(ang), jnp.ones((b, 1), jnp.float32)], axis=1)

    tile_m = _choose_tile_m(b)
    b_pad = pl.cdiv(b, tile_m) * tile_m
    x_pad = jnp.zeros((b_pad, K1), jnp.bfloat16).at[:b, :feat.shape[1]].set(
        feat.astype(jnp.bfloat16))

    grid = (b_pad // tile_m,)
    row_spec = lambda shape: pl.BlockSpec(shape, lambda i: (i, 0))
    # Constant-index_map blocks never change: single-buffered, VMEM-resident.
    res_spec = lambda shape: pl.BlockSpec(shape, lambda i: (0, 0),
                                          pipeline_mode=pl.Buffered(1))

    flops = 2 * b_pad * (K1 * HIDDEN_DIM + HIDDEN_DIM * HIDDEN_DIM
                         + HIDDEN_DIM * OUT_PAD)
    bytes_accessed = (x_pad.size * 2
                      + (w1.size + w2.size + w3.size) * 2
                      + (b2.size + b3.size) * 4
                      + b_pad * OUT_PAD * 4)

    out = pl.pallas_call(
        denoise_kernel,
        out_shape=jax.ShapeDtypeStruct((b_pad, OUT_PAD), jnp.float32),
        grid=grid,
        in_specs=[
            row_spec((tile_m, K1)),              # bf16 activation tile (advances)
            res_spec((K1, HIDDEN_DIM)),          # W1 (padded, bf16, b1 folded in)
            res_spec((HIDDEN_DIM, HIDDEN_DIM)),  # W2 (bf16)
            res_spec((1, HIDDEN_DIM)),           # b2 (f32)
            res_spec((HIDDEN_DIM, OUT_PAD)),     # W3 (padded to 128 lanes, bf16)
            res_spec((1, OUT_PAD)),              # b3 (padded, f32)
        ],
        out_specs=row_spec((tile_m, OUT_PAD)),
        compiler_params=pltpu.CompilerParams(
            dimension_semantics=("parallel",)),
        cost_estimate=pl.CostEstimate(
            flops=int(flops), transcendentals=0,
            bytes_accessed=int(bytes_accessed)),
    )(x_pad, w1, w2, b2, w3, b3)

    # TODO(synk): in the 70-step sampling loop, amortize the ~0.8 MB weight DMA
    # across timesteps (timestep grid axis or cross-call prefetch, P10) instead
    # of re-DMAing the weights every call.

    # .view(-1, x.size(1)) -- valid here because output_dim == input_dim.
    return out[:b, :OUTPUT_DIM].reshape(-1, input_dim)


def init_params(key):
    """nn.Linear default init (U(+-1/sqrt(fan_in))); f32 reference params."""
    ks = jax.random.split(key, 6)
    in1 = INPUT_DIM + EMB_DIM

    def lin(kw, kb, fan_in, fan_out):
        bound = 1.0 / np.sqrt(fan_in)
        w = jax.random.uniform(kw, (fan_in, fan_out), jnp.float32, -bound, bound)
        bb = jax.random.uniform(kb, (1, fan_out), jnp.float32, -bound, bound)
        return w, bb

    w1, b1 = lin(ks[0], ks[1], in1, HIDDEN_DIM)        # rows: [x | sin | cos]
    w2, b2 = lin(ks[2], ks[3], HIDDEN_DIM, HIDDEN_DIM)
    w3, b3 = lin(ks[4], ks[5], HIDDEN_DIM, OUTPUT_DIM)
    return (w1, b1, w2, b2, w3, b3)


def pack_params(params):
    """Pad / cast params into the kernel layout.

    * W1 padded to 128 rows; b1 folded in as row BIAS_LANE (activation lane 96
      is a constant 1.0), bf16.
    * W3/b3 zero-padded to 128 output lanes (lane-dense stores), W3 bf16.
    """
    w1, b1, w2, b2, w3, b3 = params
    w1_pad = jnp.zeros((K1, HIDDEN_DIM), jnp.float32)
    w1_pad = w1_pad.at[:INPUT_DIM + EMB_DIM].set(w1)
    w1_pad = w1_pad.at[BIAS_LANE].set(b1[0])            # bias folded into W1
    w3_pad = jnp.zeros((HIDDEN_DIM, OUT_PAD), jnp.float32).at[:, :OUTPUT_DIM].set(w3)
    b3_pad = jnp.zeros((1, OUT_PAD), jnp.float32).at[:, :OUTPUT_DIM].set(b3)
    return (w1_pad.astype(jnp.bfloat16),
            w2.astype(jnp.bfloat16), b2,
            w3_pad.astype(jnp.bfloat16), b3_pad)


def reference_forward(x, timestep, params):
    """Pure-JAX reference mirroring the PyTorch module, with the same bf16
    weight/activation rounding into the matmuls as the kernel (f32 accumulate)."""
    w1, b1, w2, b2, w3, b3 = params
    xf = x.reshape(x.shape[0], -1)
    freqs = jnp.exp(jnp.arange(HALF_DIM, dtype=jnp.float32) * -_PE_SCALE)
    ang = timestep.astype(jnp.float32)[:, None] * freqs
    pe = jnp.concatenate([jnp.sin(ang), jnp.cos(ang)], axis=-1)
    x1 = jnp.concatenate([xf, pe], axis=1)

    def lin(a, w, bb):
        return jnp.dot(a.astype(jnp.bfloat16), w.astype(jnp.bfloat16),
                       preferred_element_type=jnp.float32) + bb

    h1 = jnp.maximum(lin(x1, w1, b1), 0.0)
    h2 = jnp.maximum(lin(h1, w2, b2), 0.0)
    out = lin(h2, w3, b3)
    return out.reshape(-1, xf.shape[1])


if __name__ == "__main__":
    key = jax.random.PRNGKey(0)
    k_x, k_t, k_p = jax.random.split(key, 3)

    x = jax.random.normal(k_x, (B, T, D), dtype=jnp.float32)
    timestep = jax.random.randint(k_t, (B,), 0, 70)      # timesteps = 70
    params = init_params(k_p)
    kparams = pack_params(params)

    out = jax.block_until_ready(trajectory_denoising_forward(x, timestep, kparams))

    ref = reference_forward(x, timestep, params)
    # Tolerance sized for bf16 matmul inputs with f32 accumulation.
    np.testing.assert_allclose(np.asarray(out), np.asarray(ref),
                               rtol=2e-2, atol=2e-2)
    print("KERNEL_OK")
</pallas_src>

<mosaic_0001>
module attributes {stable_mosaic.version = 11 : i64} {
  func.func @denoise_kernel(%arg0: i32, %arg1: memref<16x128xbf16, #tpu.memory_space<vmem>>, %arg2: memref<128x512xbf16, #tpu.memory_space<vmem>>, %arg3: memref<512x512xbf16, #tpu.memory_space<vmem>>, %arg4: memref<1x512xf32, #tpu.memory_space<vmem>>, %arg5: memref<512x128xbf16, #tpu.memory_space<vmem>>, %arg6: memref<1x128xf32, #tpu.memory_space<vmem>>, %arg7: memref<16x128xf32, #tpu.memory_space<vmem>>) attributes {dimension_semantics = [#tpu.dimension_semantics<parallel>], iteration_bounds = array<i64: 1>, scalar_prefetch = 0 : i64, scratch_operands = 0 : i64, tpu.core_type = #tpu.core_type<tc>, window_params = [{transform_indices = @transform_0, window_bounds = array<i64: 16, 128>}, {pipeline_mode = #tpu.pipeline_mode<synchronous>, transform_indices = @transform_1, window_bounds = array<i64: 128, 512>}, {pipeline_mode = #tpu.pipeline_mode<synchronous>, transform_indices = @transform_2, window_bounds = array<i64: 512, 512>}, {pipeline_mode = #tpu.pipeline_mode<synchronous>, transform_indices = @transform_3, window_bounds = array<i64: 1, 512>}, {pipeline_mode = #tpu.pipeline_mode<synchronous>, transform_indices = @transform_4, window_bounds = array<i64: 512, 128>}, {pipeline_mode = #tpu.pipeline_mode<synchronous>, transform_indices = @transform_5, window_bounds = array<i64: 1, 128>}, {transform_indices = @transform_6, window_bounds = array<i64: 16, 128>}]} {
    %c0 = arith.constant 0 : index
    %c0_0 = arith.constant 0 : index
    %0 = vector.load %arg1[%c0, %c0_0] : memref<16x128xbf16, #tpu.memory_space<vmem>>, vector<16x128xbf16>
    %c0_1 = arith.constant 0 : index
    %c0_2 = arith.constant 0 : index
    %1 = vector.load %arg2[%c0_1, %c0_2] : memref<128x512xbf16, #tpu.memory_space<vmem>>, vector<128x512xbf16>
    %cst = arith.constant dense<0.000000e+00> : vector<16x512xf32>
    %2 = tpu.matmul %0, %1, %cst {dimension_numbers = #tpu.dot_dimension_numbers<[1], [0], [0], [1], [0, 0, 1, 1], [], []>} : vector<16x128xbf16>, vector<128x512xbf16>, vector<16x512xf32> -> vector<16x512xf32>
    %3 = arith.truncf %2 : vector<16x512xf32> to vector<16x512xbf16>
    %cst_3 = arith.constant 0.000000e+00 : bf16
    %4 = vector.broadcast %cst_3 : bf16 to vector<16x512xbf16>
    %5 = arith.maximumf %3, %4 : vector<16x512xbf16>
    %c0_4 = arith.constant 0 : index
    %c0_5 = arith.constant 0 : index
    %6 = vector.load %arg3[%c0_4, %c0_5] : memref<512x512xbf16, #tpu.memory_space<vmem>>, vector<512x512xbf16>
    %cst_6 = arith.constant dense<0.000000e+00> : vector<16x512xf32>
    %7 = tpu.matmul %5, %6, %cst_6 {dimension_numbers = #tpu.dot_dimension_numbers<[1], [0], [0], [1], [0, 0, 1, 1], [], []>} : vector<16x512xbf16>, vector<512x512xbf16>, vector<16x512xf32> -> vector<16x512xf32>
    %c0_7 = arith.constant 0 : index
    %c0_8 = arith.constant 0 : index
    %8 = vector.load %arg4[%c0_7, %c0_8] : memref<1x512xf32, #tpu.memory_space<vmem>>, vector<1x512xf32>
    %9 = vector.broadcast %8 : vector<1x512xf32> to vector<16x512xf32>
    %10 = arith.addf %7, %9 : vector<16x512xf32>
    %11 = arith.truncf %10 : vector<16x512xf32> to vector<16x512xbf16>
    %cst_9 = arith.constant 0.000000e+00 : bf16
    %12 = vector.broadcast %cst_9 : bf16 to vector<16x512xbf16>
    %13 = arith.maximumf %11, %12 : vector<16x512xbf16>
    %c0_10 = arith.constant 0 : index
    %c0_11 = arith.constant 0 : index
    %14 = vector.load %arg5[%c0_10, %c0_11] : memref<512x128xbf16, #tpu.memory_space<vmem>>, vector<512x128xbf16>
    %cst_12 = arith.constant dense<0.000000e+00> : vector<16x128xf32>
    %15 = tpu.matmul %13, %14, %cst_12 {dimension_numbers = #tpu.dot_dimension_numbers<[1], [0], [0], [1], [0, 0, 1, 1], [], []>} : vector<16x512xbf16>, vector<512x128xbf16>, vector<16x128xf32> -> vector<16x128xf32>
    %c0_13 = arith.constant 0 : index
    %c0_14 = arith.constant 0 : index
    %16 = vector.load %arg6[%c0_13, %c0_14] : memref<1x128xf32, #tpu.memory_space<vmem>>, vector<1x128xf32>
    %17 = vector.broadcast %16 : vector<1x128xf32> to vector<16x128xf32>
    %18 = arith.addf %15, %17 : vector<16x128xf32>
    %c0_15 = arith.constant 0 : index
    %c0_16 = arith.constant 0 : index
    %19 = vector.load %arg7[%c0_15, %c0_16] : memref<16x128xf32, #tpu.memory_space<vmem>>, vector<16x128xf32>
    tpu.vector_store %arg7[%c0_15, %c0_16], %18 {strides = array<i32>} : memref<16x128xf32, #tpu.memory_space<vmem>>, vector<16x128xf32>,
    return
  }
  func.func @transform_0(%arg0: i32) -> (i32, i32) {
    %c0_i32 = arith.constant 0 : i32
    %c0_i32_0 = arith.constant 0 : i32
    return %arg0, %c0_i32 : i32, i32
  }
  func.func @transform_1(%arg0: i32) -> (i32, i32) {
    %c0_i32 = arith.constant 0 : i32
    %c0_i32_0 = arith.constant 0 : i32
    %c0_i32_1 = arith.constant 0 : i32
    return %c0_i32, %c0_i32_0 : i32, i32
  }
  func.func @transform_2(%arg0: i32) -> (i32, i32) {
    %c0_i32 = arith.constant 0 : i32
    %c0_i32_0 = arith.constant 0 : i32
    %c0_i32_1 = arith.constant 0 : i32
    return %c0_i32, %c0_i32_0 : i32, i32
  }
  func.func @transform_3(%arg0: i32) -> (i32, i32) {
    %c0_i32 = arith.constant 0 : i32
    %c0_i32_0 = arith.constant 0 : i32
    %c0_i32_1 = arith.constant 0 : i32
    return %c0_i32, %c0_i32_0 : i32, i32
  }
  func.func @transform_4(%arg0: i32) -> (i32, i32) {
    %c0_i32 = arith.constant 0 : i32
    %c0_i32_0 = arith.constant 0 : i32
    %c0_i32_1 = arith.constant 0 : i32
    return %c0_i32, %c0_i32_0 : i32, i32
  }
  func.func @transform_5(%arg0: i32) -> (i32, i32) {
    %c0_i32 = arith.constant 0 : i32
    %c0_i32_0 = arith.constant 0 : i32
    %c0_i32_1 = arith.constant 0 : i32
    return %c0_i32, %c0_i32_0 : i32, i32
  }
  func.func @transform_6(%arg0: i32) -> (i32, i32) {
    %c0_i32 = arith.constant 0 : i32
    %c0_i32_0 = arith.constant 0 : i32
    return %arg0, %c0_i32 : i32, i32
  }
}

</mosaic_0001>

<bundles_post_ra>
// kernel: trajectory_denoising_forward.1
= control target key start
LH: loop header
LB: loop body
LE: loop exit
PB: predicated region body
PF: predicated region fallthrough
CT: control target
= control target key end

     0   :  { %11 = vsyncpa [#allocation3], 0  ;;  %s2845_s0 = inlined_call_operand.vmem [shape: bf16[16,128], index: 0, kind: input, shape index: {}]   ;;  %s2846_s1 = inlined_call_operand.hbm [shape: bf16[128,512], index: 1, kind: input, shape index: {}]   ;;  %s2847_s2 = inlined_call_operand.hbm [shape: bf16[512,512], index: 2, kind: input, shape index: {}]   ;;  %s2848_s3 = inlined_call_operand.vmem [shape: f32[1,512], index: 3, kind: input, shape index: {}]   ;;  %s2849_s4 = inlined_call_operand.hbm [shape: bf16[512,128], index: 4, kind: input, shape index: {}]   ;;  %s2850_s5 = inlined_call_operand.vmem [shape: f32[1,128], index: 5, kind: input, shape index: {}]   ;;  %s2851_s6 = inlined_call_operand.vmem [shape: f32[16,128], index: 6, kind: output, shape index: {}]  }
   0x1   :  { %12 = vsyncpa [#allocation5], 0  ;;  %s32_s23 = sshll.u32 %s2847_s2, 4  ;;  %s2749_s24 = smov [#allocation4]   ;;  %s33_s23 = int_to_ptr.hbm [resolvable:$true] %s32_s23 }
   0x2   :  { %s34_s25 = sshll.u32 %s2749_s24, 4  ;;  %s19_s28 = sshll.u32 %s2846_s1, 4  ;;  %s35_s25 = int_to_ptr.vmem [resolvable:$true] %s34_s25  ;;  %s20_s28 = int_to_ptr.hbm [resolvable:$true] %s19_s28 }
   0x3   :  { %s2750_s29 = smov 256   ;;  %s2751_s30 = smov 16  }
   0x4   :  { %40 = dma.hbm_to_vmem [thread:$0]  %s33_s23, 16384, %s35_s25, [#allocation5], %s2750_s29, %s2750_s29, %s2751_s30  }
   0x5   :  { %s2752_s7 = smov [#allocation2]   ;;  %s47_s11 = sshll.u32 %s2849_s4, 4  ;;  %s48_s11 = int_to_ptr.hbm [resolvable:$true] %s47_s11 }
   0x6   :  { %s21_s8 = sshll.u32 %s2752_s7, 4  ;;  %s2753_s2 = smov [#allocation6]   ;;  %s22_s8 = int_to_ptr.vmem [resolvable:$true] %s21_s8 }
   0x7   :  { %27 = dma.hbm_to_vmem [thread:$0]  %s20_s28, 4096, %s22_s8, [#allocation3], %s2750_s29, %s2750_s29, %s2751_s30  }
   0x8   :  { %s49_s12 = sshll.u32 %s2753_s2, 4  ;;  %s2754_s13 = smov 64   ;;  %s50_s12 = int_to_ptr.vmem [resolvable:$true] %s49_s12 }
   0x9   :  { %s2755_s14 = smov 4  }
   0xa   :  { %55 = dma.hbm_to_vmem [thread:$0]  %s48_s11, 4096, %s50_s12, [#allocation5], %s2754_s13, %s2754_s13, %s2755_s14  }
   0xb   :  { %2745 = dma.done.wait [#allocation3], 4096  }
   0xc   :  { %2746 = vsyncadd [#allocation3], 4294963200 }
   0xd   :  { %2747 = dma.done.wait [#allocation5], 20480  }
   0xe   :  { %2748 = vsyncadd [#allocation5], 4294946816  ;;  %v1818_v0 = vld [vmem:[#allocation2 + $0xe0] sm:$0xf]  ;;  %v2503_v1 = vld [vmem:[#allocation2 + $0xec] sm:$0xf0] }
   0xf   :  { %v2501_v2 = vld [vmem:[#allocation2 + $0xe4] sm:$0xf]  ;;  %v1819_v3 = vor.u32 %v2503_v1, %v1818_v0  ;;  %v1820_v4 = vld [vmem:[#allocation2 + $0xf0] sm:$0xf0]  ;;  %v1826_v5 = vld [vmem:[#allocation2 + $0xe8] sm:$0xf] }
  0x10   :  { %v2504_v6 = vld [vmem:[#allocation2 + $0xf4] sm:$0xf0]  ;;  %v1823_v7 = vor.u32 %v2501_v2, %v1820_v4  ;;  %v2502_v9 = vld [vmem:[#allocation2 + $0xec] sm:$0xf]  ;;  %v1828_v10 = vld [vmem:[#allocation2 + $0xf8] sm:$0xf0] }
  0x11   :  { %v1827_v8 = vor.u32 %v2504_v6, %v1826_v5  ;;  %v1802_v11 = vld [vmem:[#allocation2 + $0xc0] sm:$0xf]  ;;  %270 = vmatpush.bf16.msra.mxu0 %v1819_v3  ;;  %v1831_v12 = vor.u32 %v2502_v9, %v1828_v10  ;;  %v2499_v13 = vld [vmem:[#allocation2 + $0xcc] sm:$0xf0]  ;;  %v2497_v14 = vld [vmem:[#allocation2 + $0xc4] sm:$0xf] }
  0x12   :  { %v1804_v15 = vld [vmem:[#allocation2 + $0xd0] sm:$0xf0]  ;;  %284 = vmatpush.bf16.msra.mxu1 %v1823_v7  ;;  %v1803_v16 = vor.u32 %v2499_v13, %v1802_v11  ;;  %v1810_v18 = vld [vmem:[#allocation2 + $0xc8] sm:$0xf]  ;;  %v2500_v19 = vld [vmem:[#allocation2 + $0xd4] sm:$0xf0] }
  0x13   :  { %298 = vmatpush.bf16.msra.mxu2 %v1827_v8  ;;  %v1807_v17 = vor.u32 %v2497_v14, %v1804_v15  ;;  %v2498_v20 = vld [vmem:[#allocation2 + $0xcc] sm:$0xf]  ;;  %312 = vmatpush.bf16.msra.mxu3 %v1831_v12  ;;  %v1811_v21 = vor.u32 %v2500_v19, %v1810_v18  ;;  %v1812_v22 = vld [vmem:[#allocation2 + $0xd8] sm:$0xf0]  ;;  %v1786_v23 = vld [vmem:[#allocation2 + $0xa0] sm:$0xf] }
  0x14   :  { %v2495_v24 = vld [vmem:[#allocation2 + $0xac] sm:$0xf0]  ;;  %v1815_v25 = vor.u32 %v2498_v20, %v1812_v22  ;;  %v2493_v26 = vld [vmem:[#allocation2 + $0xa4] sm:$0xf]  ;;  %v1788_v27 = vld [vmem:[#allocation2 + $0xb0] sm:$0xf0] }
  0x15   :  { %v1794_v28 = vld [vmem:[#allocation2 + $0xa8] sm:$0xf]  ;;  %271 = vmatpush.bf16.msra.mxu0 %v1803_v16  ;;  %v1787_v29 = vor.u32 %v2495_v24, %v1786_v23  ;;  %v2496_v30 = vld [vmem:[#allocation2 + $0xb4] sm:$0xf0]  ;;  %v2494_v31 = vld [vmem:[#allocation2 + $0xac] sm:$0xf]  ;;  %v1791_v33 = vor.u32 %v2493_v26, %v1788_v27 }
  0x16   :  { %v1796_v32 = vld [vmem:[#allocation2 + $0xb8] sm:$0xf0]  ;;  %285 = vmatpush.bf16.msra.mxu1 %v1807_v17  ;;  %v1795_v34 = vor.u32 %v2496_v30, %v1794_v28  ;;  %v1770_v35 = vld [vmem:[#allocation2 + $0x80] sm:$0xf]  ;;  %v2491_v36 = vld [vmem:[#allocation2 + $0x8c] sm:$0xf0] }
  0x17   :  { %299 = vmatpush.bf16.msra.mxu2 %v1811_v21  ;;  %v2489_v37 = vld [vmem:[#allocation2 + $0x84] sm:$0xf]  ;;  %313 = vmatpush.bf16.msra.mxu3 %v1815_v25  ;;  %v1799_v38 = vor.u32 %v2494_v31, %v1796_v32  ;;  %v1772_v39 = vld [vmem:[#allocation2 + $0x90] sm:$0xf0]  ;;  %v1778_v40 = vld [vmem:[#allocation2 + $0x88] sm:$0xf]  ;;  %v1771_v44 = vor.u32 %v2491_v36, %v1770_v35 }
  0x18   :  { %v2492_v41 = vld [vmem:[#allocation2 + $0x94] sm:$0xf0]  ;;  %v2490_v42 = vld [vmem:[#allocation2 + $0x8c] sm:$0xf]  ;;  %v1780_v43 = vld [vmem:[#allocation2 + $0x98] sm:$0xf0]  ;;  %v1775_v45 = vor.u32 %v2489_v37, %v1772_v39 }
  0x19   :  { %272 = vmatpush.bf16.msra.mxu0 %v1787_v29  ;;  %v1779_v46 = vor.u32 %v2492_v41, %v1778_v40  ;;  %v1754_v47 = vld [vmem:[#allocation2 + $0x60] sm:$0xf]  ;;  %v2487_v48 = vld [vmem:[#allocation2 + $0x6c] sm:$0xf0]  ;;  %v2485_v49 = vld [vmem:[#allocation2 + $0x64] sm:$0xf]  ;;  %v1783_v50 = vor.u32 %v2490_v42, %v1780_v43 }
  0x1a   :  { %286 = vmatpush.bf16.msra.mxu1 %v1791_v33  ;;  %v1756_v51 = vld [vmem:[#allocation2 + $0x70] sm:$0xf0]  ;;  %v1762_v52 = vld [vmem:[#allocation2 + $0x68] sm:$0xf]  ;;  %v2488_v53 = vld [vmem:[#allocation2 + $0x74] sm:$0xf0]  ;;  %v1755_v56 = vor.u32 %v2487_v48, %v1754_v47 }
  0x1b   :  { %300 = vmatpush.bf16.msra.mxu2 %v1795_v34  ;;  %314 = vmatpush.bf16.msra.mxu3 %v1799_v38  ;;  %v2486_v54 = vld [vmem:[#allocation2 + $0x6c] sm:$0xf]  ;;  %v1764_v55 = vld [vmem:[#allocation2 + $0x78] sm:$0xf0]  ;;  %v1759_v57 = vor.u32 %v2485_v49, %v1756_v51  ;;  %v1763_v58 = vor.u32 %v2488_v53, %v1762_v52  ;;  %v1738_v59 = vld [vmem:[#allocation2 + $0x40] sm:$0xf] }
  0x1c   :  { %v2483_v60 = vld [vmem:[#allocation2 + $0x4c] sm:$0xf0]  ;;  %v2481_v61 = vld [vmem:[#allocation2 + $0x44] sm:$0xf]  ;;  %v1767_v62 = vor.u32 %v2486_v54, %v1764_v55  ;;  %v1740_v63 = vld [vmem:[#allocation2 + $0x50] sm:$0xf0] }
  0x1d   :  { %273 = vmatpush.bf16.msra.mxu0 %v1771_v44  ;;  %v1746_v0 = vld [vmem:[#allocation2 + $0x48] sm:$0xf]  ;;  %v2484_v1 = vld [vmem:[#allocation2 + $0x54] sm:$0xf0]  ;;  %v2482_v2 = vld [vmem:[#allocation2 + $0x4c] sm:$0xf]  ;;  %v1739_v4 = vor.u32 %v2483_v60, %v1738_v59  ;;  %v1743_v5 = vor.u32 %v2481_v61, %v1740_v63 }
  0x1e   :  { %287 = vmatpush.bf16.msra.mxu1 %v1775_v45  ;;  %v1748_v3 = vld [vmem:[#allocation2 + $0x58] sm:$0xf0]  ;;  %v1747_v6 = vor.u32 %v2484_v1, %v1746_v0  ;;  %v1722_v7 = vld [vmem:[#allocation2 + $0x20] sm:$0xf]  ;;  %v2479_v8 = vld [vmem:[#allocation2 + $0x2c] sm:$0xf0] }
  0x1f   :  { %301 = vmatpush.bf16.msra.mxu2 %v1779_v46  ;;  %315 = vmatpush.bf16.msra.mxu3 %v1783_v50  ;;  %v2477_v9 = vld [vmem:[#allocation2 + $0x24] sm:$0xf]  ;;  %v1751_v10 = vor.u32 %v2482_v2, %v1748_v3  ;;  %v1724_v11 = vld [vmem:[#allocation2 + $0x30] sm:$0xf0]  ;;  %v1730_v12 = vld [vmem:[#allocation2 + $0x28] sm:$0xf]  ;;  %v1723_v16 = vor.u32 %v2479_v8, %v1722_v7 }
  0x20   :  { %v2480_v13 = vld [vmem:[#allocation2 + $0x34] sm:$0xf0]  ;;  %v2478_v14 = vld [vmem:[#allocation2 + $0x2c] sm:$0xf]  ;;  %v1732_v15 = vld [vmem:[#allocation2 + $0x38] sm:$0xf0]  ;;  %v1727_v18 = vor.u32 %v2477_v9, %v1724_v11 }
  0x21   :  { %274 = vmatpush.bf16.msra.mxu0 %v1755_v56  ;;  %v1706_v17 = vld [vmem:[#allocation2] sm:$0xf]  ;;  %v1731_v19 = vor.u32 %v2480_v13, %v1730_v12  ;;  %v2475_v20 = vld [vmem:[#allocation2 + $0xc] sm:$0xf0]  ;;  %v2473_v21 = vld [vmem:[#allocation2 + $0x4] sm:$0xf]  ;;  %v1735_v23 = vor.u32 %v2478_v14, %v1732_v15 }
  0x22   :  { %288 = vmatpush.bf16.msra.mxu1 %v1759_v57  ;;  %v1708_v22 = vld [vmem:[#allocation2 + $0x10] sm:$0xf0]  ;;  %v1714_v24 = vld [vmem:[#allocation2 + $0x8] sm:$0xf]  ;;  %v2476_v25 = vld [vmem:[#allocation2 + $0x14] sm:$0xf0]  ;;  %v1707_v30 = vor.u32 %v2475_v20, %v1706_v17 }
  0x23   :  { %302 = vmatpush.bf16.msra.mxu2 %v1763_v58  ;;  %316 = vmatpush.bf16.msra.mxu3 %v1767_v62  ;;  %v2474_v26 = vld [vmem:[#allocation2 + $0xc] sm:$0xf]  ;;  %v1716_v27 = vld [vmem:[#allocation2 + $0x18] sm:$0xf0]  ;;  %v1946_v28 = vld [vmem:[#allocation4 + $0xe0] sm:$0xf]  ;;  %v1711_v33 = vor.u32 %v2473_v21, %v1708_v22  ;;  %v1715_v34 = vor.u32 %v2476_v25, %v1714_v24 }
  0x24   :  { %v2535_v29 = vld [vmem:[#allocation4 + $0xec] sm:$0xf0]  ;;  %v2074_v31 = vld [vmem:[#allocation4 + $0x1e0] sm:$0xf]  ;;  %v1719_v36 = vor.u32 %v2474_v26, %v1716_v27 }
  0x25   :  { %275 = vmatpush.bf16.msra.mxu0 %v1739_v4  ;;  %v2567_v32 = vld [vmem:[#allocation4 + $0x1ec] sm:$0xf0]  ;;  %v2472_v35 = vld [vmem:[%s2845_s0] sm:$0xff]  ;;  %v1947_v37 = vor.u32 %v2535_v29, %v1946_v28 }
  0x26   :  { %289 = vmatpush.bf16.msra.mxu1 %v1743_v5  ;;  %v1930_v38 = vld [vmem:[#allocation4 + $0xc0] sm:$0xf]  ;;  %v2599_v40 = vld [vmem:[#allocation4 + $0x2ec] sm:$0xf0]  ;;  %v2075_v41 = vor.u32 %v2567_v32, %v2074_v31 }
  0x27   :  { %303 = vmatpush.bf16.msra.mxu2 %v1747_v6  ;;  %317 = vmatpush.bf16.msra.mxu3 %v1751_v10  ;;  %v2202_v39 = vld [vmem:[#allocation4 + $0x2e0] sm:$0xf]  ;;  %v2531_v42 = vld [vmem:[#allocation4 + $0xcc] sm:$0xf0] }
  0x28   :  { %v2330_v43 = vld [vmem:[#allocation4 + $0x3e0] sm:$0xf]  ;;  %v2631_v44 = vld [vmem:[#allocation4 + $0x3ec] sm:$0xf0]  ;;  %v2203_v47 = vor.u32 %v2599_v40, %v2202_v39  ;;  %v1931_v48 = vor.u32 %v2531_v42, %v1930_v38 }
  0x29   :  { %276 = vmatpush.bf16.msra.mxu0 %v1723_v16  ;;  %v2058_v45 = vld [vmem:[#allocation4 + $0x1c0] sm:$0xf]  ;;  %v2563_v46 = vld [vmem:[#allocation4 + $0x1cc] sm:$0xf0]  ;;  %v2331_v49 = vor.u32 %v2631_v44, %v2330_v43 }
  0x2a   :  { %290 = vmatpush.bf16.msra.mxu1 %v1727_v18  ;;  %v1914_v50 = vld [vmem:[#allocation4 + $0xa0] sm:$0xf]  ;;  %v2595_v52 = vld [vmem:[#allocation4 + $0x2cc] sm:$0xf0]  ;;  %v2059_v53 = vor.u32 %v2563_v46, %v2058_v45 }
  0x2b   :  { %304 = vmatpush.bf16.msra.mxu2 %v1731_v19  ;;  %318 = vmatpush.bf16.msra.mxu3 %v1735_v23  ;;  %v2186_v51 = vld [vmem:[#allocation4 + $0x2c0] sm:$0xf]  ;;  %v2527_v54 = vld [vmem:[#allocation4 + $0xac] sm:$0xf0] }
  0x2c   :  { %v2314_v55 = vld [vmem:[#allocation4 + $0x3c0] sm:$0xf]  ;;  %v2627_v56 = vld [vmem:[#allocation4 + $0x3cc] sm:$0xf0]  ;;  %v2187_v59 = vor.u32 %v2595_v52, %v2186_v51  ;;  %v1915_v60 = vor.u32 %v2527_v54, %v1914_v50 }
  0x2d   :  { %277 = vmatpush.bf16.msra.mxu0 %v1707_v30  ;;  %v2042_v57 = vld [vmem:[#allocation4 + $0x1a0] sm:$0xf]  ;;  %v2559_v58 = vld [vmem:[#allocation4 + $0x1ac] sm:$0xf0]  ;;  %v2315_v61 = vor.u32 %v2627_v56, %v2314_v55  ;;  %v2533_v55 = vld [vmem:[#allocation4 + $0xe4] sm:$0xf] }
  0x2e   :  { %291 = vmatpush.bf16.msra.mxu1 %v1711_v33  ;;  %v1898_v62 = vld [vmem:[#allocation4 + $0x80] sm:$0xf]  ;;  %v2591_v0 = vld [vmem:[#allocation4 + $0x2ac] sm:$0xf0]  ;;  %v2043_v1 = vor.u32 %v2559_v58, %v2042_v57  ;;  %v1948_v56 = vld [vmem:[#allocation4 + $0xf0] sm:$0xf0] }
  0x2f   :  { %305 = vmatpush.bf16.msra.mxu2 %v1715_v34  ;;  %319 = vmatpush.bf16.msra.mxu3 %v1719_v36  ;;  %v2170_v63 = vld [vmem:[#allocation4 + $0x2a0] sm:$0xf]  ;;  %v2523_v2 = vld [vmem:[#allocation4 + $0x8c] sm:$0xf0]  ;;  %v2565_v57 = vld [vmem:[#allocation4 + $0x1e4] sm:$0xf] }
  0x30   :  { %278 = vmatmul.bf16.vlgmr.msra.gmra.mxu0 %v2472_v35  ;;  %v2298_v3 = vld [vmem:[#allocation4 + $0x3a0] sm:$0xf]  ;;  %v2623_v4 = vld [vmem:[#allocation4 + $0x3ac] sm:$0xf0]  ;;  %v2171_v7 = vor.u32 %v2591_v0, %v2170_v63  ;;  %v1899_v8 = vor.u32 %v2523_v2, %v1898_v62  ;;  %v2076_v58 = vld [vmem:[#allocation4 + $0x1f0] sm:$0xf0] }
  0x31   :  { %1128 = vmatpush.bf16.msrb.mxu0 %v1947_v37  ;;  %292 = vmatmul.bf16.vlgmr.msra.gmra.mxu1 %v2472_v35  ;;  %v2026_v5 = vld [vmem:[#allocation4 + $0x180] sm:$0xf]  ;;  %v2555_v6 = vld [vmem:[#allocation4 + $0x18c] sm:$0xf0]  ;;  %v2299_v9 = vor.u32 %v2623_v4, %v2298_v3  ;;  %v2529_v62 = vld [vmem:[#allocation4 + $0xc4] sm:$0xf]  ;;  %v1951_v3 = vor.u32 %v2533_v55, %v1948_v56 }
  0x32   :  { %1142 = vmatpush.bf16.msrb.mxu1 %v2075_v41  ;;  %306 = vmatmul.bf16.vlgmr.msra.gmra.mxu2 %v2472_v35  ;;  %v1882_v10 = vld [vmem:[#allocation4 + $0x60] sm:$0xf]  ;;  %v2587_v12 = vld [vmem:[#allocation4 + $0x28c] sm:$0xf0]  ;;  %v2027_v13 = vor.u32 %v2555_v6, %v2026_v5  ;;  %v2597_v5 = vld [vmem:[#allocation4 + $0x2e4] sm:$0xf] }
  0x33   :  { %320 = vmatmul.bf16.vlgmr.msra.gmra.mxu3 %v2472_v35  ;;  %1156 = vmatpush.bf16.msrb.mxu2 %v2203_v47  ;;  %v2154_v11 = vld [vmem:[#allocation4 + $0x280] sm:$0xf]  ;;  %v2519_v14 = vld [vmem:[#allocation4 + $0x6c] sm:$0xf0]  ;;  %v2204_v6 = vld [vmem:[#allocation4 + $0x2f0] sm:$0xf0] }
  0x34   :  { %1170 = vmatpush.bf16.msrb.mxu3 %v2331_v49  ;;  %v2282_v15 = vld [vmem:[#allocation4 + $0x380] sm:$0xf]  ;;  %v2619_v16 = vld [vmem:[#allocation4 + $0x38c] sm:$0xf0]  ;;  %v2155_v19 = vor.u32 %v2587_v12, %v2154_v11  ;;  %v1883_v20 = vor.u32 %v2519_v14, %v1882_v10  ;;  %v2332_v10 = vld [vmem:[#allocation4 + $0x3f0] sm:$0xf0] }
  0x35   :  { %1129 = vmatpush.bf16.msrb.mxu0 %v1931_v48  ;;  %v2010_v17 = vld [vmem:[#allocation4 + $0x160] sm:$0xf]  ;;  %v2551_v18 = vld [vmem:[#allocation4 + $0x16c] sm:$0xf0]  ;;  %v2283_v21 = vor.u32 %v2619_v16, %v2282_v15  ;;  %v2561_v11 = vld [vmem:[#allocation4 + $0x1c4] sm:$0xf]  ;;  %v2207_v15 = vor.u32 %v2597_v5, %v2204_v6 }
  0x36   :  { %1143 = vmatpush.bf16.msrb.mxu1 %v2059_v53  ;;  %v1866_v22 = vld [vmem:[#allocation4 + $0x40] sm:$0xf]  ;;  %v2583_v24 = vld [vmem:[#allocation4 + $0x26c] sm:$0xf0]  ;;  %v2011_v25 = vor.u32 %v2551_v18, %v2010_v17  ;;  %v2060_v12 = vld [vmem:[#allocation4 + $0x1d0] sm:$0xf0] }
  0x37   :  { %1157 = vmatpush.bf16.msrb.mxu2 %v2187_v59  ;;  %v2138_v23 = vld [vmem:[#allocation4 + $0x260] sm:$0xf]  ;;  %v2515_v26 = vld [vmem:[#allocation4 + $0x4c] sm:$0xf0]  ;;  %v2525_v18 = vld [vmem:[#allocation4 + $0xa4] sm:$0xf] }
  0x38   :  { %1171 = vmatpush.bf16.msrb.mxu3 %v2315_v61  ;;  %v2266_v27 = vld [vmem:[#allocation4 + $0x360] sm:$0xf]  ;;  %v2615_v28 = vld [vmem:[#allocation4 + $0x36c] sm:$0xf0]  ;;  %v2139_v31 = vor.u32 %v2583_v24, %v2138_v23  ;;  %v1867_v32 = vor.u32 %v2515_v26, %v1866_v22  ;;  %v1916_v22 = vld [vmem:[#allocation4 + $0xb0] sm:$0xf0] }
  0x39   :  { %1130 = vmatpush.bf16.msrb.mxu0 %v1915_v60  ;;  %v1994_v29 = vld [vmem:[#allocation4 + $0x140] sm:$0xf]  ;;  %v2547_v30 = vld [vmem:[#allocation4 + $0x14c] sm:$0xf0]  ;;  %v2267_v33 = vor.u32 %v2615_v28, %v2266_v27  ;;  %v2625_v23 = vld [vmem:[#allocation4 + $0x3c4] sm:$0xf]  ;;  %v1919_v28 = vor.u32 %v2525_v18, %v1916_v22 }
  0x3a   :  { %1144 = vmatpush.bf16.msrb.mxu1 %v2043_v1  ;;  %v1850_v34 = vld [vmem:[#allocation4 + $0x20] sm:$0xf]  ;;  %v2579_v36 = vld [vmem:[#allocation4 + $0x24c] sm:$0xf0]  ;;  %v1995_v37 = vor.u32 %v2547_v30, %v1994_v29  ;;  %v2316_v24 = vld [vmem:[#allocation4 + $0x3d0] sm:$0xf0] }
  0x3b   :  { %1158 = vmatpush.bf16.msrb.mxu2 %v2171_v7  ;;  %v2122_v35 = vld [vmem:[#allocation4 + $0x240] sm:$0xf]  ;;  %v2511_v38 = vld [vmem:[#allocation4 + $0x2c] sm:$0xf0]  ;;  %v2079_v7 = vor.u32 %v2565_v57, %v2076_v58  ;;  %v2044_v26 = vld [vmem:[#allocation4 + $0x1b0] sm:$0xf0]  ;;  %v2319_v29 = vor.u32 %v2625_v23, %v2316_v24 }
  0x3c   :  { %1172 = vmatpush.bf16.msrb.mxu3 %v2299_v9  ;;  %v2250_v39 = vld [vmem:[#allocation4 + $0x340] sm:$0xf]  ;;  %v2611_v40 = vld [vmem:[#allocation4 + $0x34c] sm:$0xf0]  ;;  %v2123_v43 = vor.u32 %v2579_v36, %v2122_v35  ;;  %v1851_v45 = vor.u32 %v2511_v38, %v1850_v34  ;;  %v2629_v9 = vld [vmem:[#allocation4 + $0x3e4] sm:$0xf] }
  0x3d   :  { %1131 = vmatpush.bf16.msrb.mxu0 %v1899_v8  ;;  %v1978_v41 = vld [vmem:[#allocation4 + $0x120] sm:$0xf]  ;;  %v2543_v42 = vld [vmem:[#allocation4 + $0x12c] sm:$0xf0]  ;;  %v2251_v46 = vor.u32 %v2611_v40, %v2250_v39  ;;  %v1932_v8 = vld [vmem:[#allocation4 + $0xd0] sm:$0xf0]  ;;  %v2335_v17 = vor.u32 %v2629_v9, %v2332_v10 }
  0x3e   :  { %1145 = vmatpush.bf16.msrb.mxu1 %v2027_v13  ;;  %v1834_v44 = vld [vmem:[#allocation4] sm:$0xf]  ;;  %v2507_v47 = vld [vmem:[#allocation4 + $0xc] sm:$0xf0]  ;;  %v1979_v50 = vor.u32 %v2543_v42, %v1978_v41  ;;  %v1935_v16 = vor.u32 %v2529_v62, %v1932_v8  ;;  %v2521_v30 = vld [vmem:[#allocation4 + $0x84] sm:$0xf] }
  0x3f   :  { %1159 = vmatpush.bf16.msrb.mxu2 %v2155_v19  ;;  %v2106_v48 = vld [vmem:[#allocation4 + $0x220] sm:$0xf]  ;;  %v2575_v49 = vld [vmem:[#allocation4 + $0x22c] sm:$0xf0]  ;;  %v1835_v60 = vor.u32 %v2507_v47, %v1834_v44  ;;  %v2593_v19 = vld [vmem:[#allocation4 + $0x2c4] sm:$0xf] }
  0x40   :  { %1173 = vmatpush.bf16.msrb.mxu3 %v2283_v21  ;;  %v1962_v51 = vld [vmem:[#allocation4 + $0x100] sm:$0xf]  ;;  %v2607_v53 = vld [vmem:[#allocation4 + $0x32c] sm:$0xf0]  ;;  %v2107_v59 = vor.u32 %v2575_v49, %v2106_v48  ;;  %v2063_v21 = vor.u32 %v2561_v11, %v2060_v12  ;;  %v1900_v34 = vld [vmem:[#allocation4 + $0x90] sm:$0xf0] }
  0x41   :  { %1132 = vmatpush.bf16.msrb.mxu0 %v1883_v20  ;;  %v2234_v52 = vld [vmem:[#allocation4 + $0x320] sm:$0xf]  ;;  %v2539_v54 = vld [vmem:[#allocation4 + $0x10c] sm:$0xf0]  ;;  %v2188_v20 = vld [vmem:[#allocation4 + $0x2d0] sm:$0xf0]  ;;  %v1903_v40 = vor.u32 %v2521_v30, %v1900_v34 }
  0x42   :  { %1146 = vmatpush.bf16.msrb.mxu1 %v2011_v25  ;;  %v2235_v61 = vor.u32 %v2607_v53, %v2234_v52  ;;  %v2090_v63 = vld [vmem:[#allocation4 + $0x200] sm:$0xf]  ;;  %v2571_v0 = vld [vmem:[#allocation4 + $0x20c] sm:$0xf0]  ;;  %v1963_v2 = vor.u32 %v2539_v54, %v1962_v51  ;;  %v2557_v25 = vld [vmem:[#allocation4 + $0x1a4] sm:$0xf]  ;;  %v2191_v27 = vor.u32 %v2593_v19, %v2188_v20 }
  0x43   :  { %1160 = vmatpush.bf16.msrb.mxu2 %v2139_v31  ;;  %v2218_v1 = vld [vmem:[#allocation4 + $0x300] sm:$0xf]  ;;  %v2603_v4 = vld [vmem:[#allocation4 + $0x30c] sm:$0xf0]  ;;  %v2091_v13 = vor.u32 %v2571_v0, %v2090_v63  ;;  %v2589_v31 = vld [vmem:[#allocation4 + $0x2a4] sm:$0xf] }
  0x44   :  { %1174 = vmatpush.bf16.msrb.mxu3 %v2267_v33  ;;  %v2219_v14 = vor.u32 %v2603_v4, %v2218_v1  ;;  %v2047_v33 = vor.u32 %v2557_v25, %v2044_v26  ;;  %v2621_v35 = vld [vmem:[#allocation4 + $0x3a4] sm:$0xf]  ;;  %v2300_v36 = vld [vmem:[#allocation4 + $0x3b0] sm:$0xf0] }
  0x45   :  { %1133 = vmatpush.bf16.msrb.mxu0 %v1867_v32  ;;  %v2172_v32 = vld [vmem:[#allocation4 + $0x2b0] sm:$0xf0]  ;;  %v2303_v41 = vor.u32 %v2621_v35, %v2300_v36  ;;  %v2585_v49 = vld [vmem:[#allocation4 + $0x284] sm:$0xf] }
  0x46   :  { %1147 = vmatpush.bf16.msrb.mxu1 %v1995_v37  ;;  %v2553_v37 = vld [vmem:[#allocation4 + $0x184] sm:$0xf]  ;;  %v2028_v38 = vld [vmem:[#allocation4 + $0x190] sm:$0xf0]  ;;  %v2175_v39 = vor.u32 %v2589_v31, %v2172_v32 }
  0x47   :  { %1161 = vmatpush.bf16.msrb.mxu2 %v2123_v43  ;;  %v2031_v42 = vor.u32 %v2553_v37, %v2028_v38  ;;  %v2517_v43 = vld [vmem:[#allocation4 + $0x64] sm:$0xf]  ;;  %v1884_v44 = vld [vmem:[#allocation4 + $0x70] sm:$0xf0]  ;;  %v1954_v37 = vld [vmem:[#allocation4 + $0xe8] sm:$0xf] }
  0x48   :  { %1175 = vmatpush.bf16.msrb.mxu3 %v2251_v46  ;;  %v1887_v46 = vor.u32 %v2517_v43, %v1884_v44  ;;  %v2012_v47 = vld [vmem:[#allocation4 + $0x170] sm:$0xf0]  ;;  %v2617_v51 = vld [vmem:[#allocation4 + $0x384] sm:$0xf]  ;;  %v2536_v38 = vld [vmem:[#allocation4 + $0xf4] sm:$0xf0] }
  0x49   :  { %1134 = vmatpush.bf16.msrb.mxu0 %v1851_v45  ;;  %v2549_v45 = vld [vmem:[#allocation4 + $0x164] sm:$0xf]  ;;  %v2284_v53 = vld [vmem:[#allocation4 + $0x390] sm:$0xf0]  ;;  %v2568_v43 = vld [vmem:[#allocation4 + $0x1f4] sm:$0xf0] }
  0x4a   :  { %1148 = vmatpush.bf16.msrb.mxu1 %v1979_v50  ;;  %v2015_v48 = vor.u32 %v2549_v45, %v2012_v47  ;;  %v2156_v50 = vld [vmem:[#allocation4 + $0x290] sm:$0xf0]  ;;  %v2513_v54 = vld [vmem:[#allocation4 + $0x44] sm:$0xf]  ;;  %v2287_v56 = vor.u32 %v2617_v51, %v2284_v53  ;;  %v1955_v47 = vor.u32 %v2536_v38, %v1954_v37  ;;  %v2532_v51 = vld [vmem:[#allocation4 + $0xd4] sm:$0xf0] }
  0x4b   :  { %1162 = vmatpush.bf16.msrb.mxu2 %v2107_v59  ;;  %v2159_v52 = vor.u32 %v2585_v49, %v2156_v50  ;;  %v1868_v55 = vld [vmem:[#allocation4 + $0x50] sm:$0xf0]  ;;  %v2545_v58 = vld [vmem:[#allocation4 + $0x144] sm:$0xf]  ;;  %v1938_v50 = vld [vmem:[#allocation4 + $0xc8] sm:$0xf] }
  0x4c   :  { %1176 = vmatpush.bf16.msrb.mxu3 %v2235_v61  ;;  %v1871_v57 = vor.u32 %v2513_v54, %v1868_v55  ;;  %v1996_v59 = vld [vmem:[#allocation4 + $0x150] sm:$0xf0]  ;;  %v2581_v61 = vld [vmem:[#allocation4 + $0x264] sm:$0xf]  ;;  %v2066_v53 = vld [vmem:[#allocation4 + $0x1c8] sm:$0xf]  ;;  %v1939_v55 = vor.u32 %v2532_v51, %v1938_v50 }
  0x4d   :  { %1135 = vmatpush.bf16.msrb.mxu0 %v1835_v60  ;;  %v1999_v60 = vor.u32 %v2545_v58, %v1996_v59  ;;  %v2140_v62 = vld [vmem:[#allocation4 + $0x270] sm:$0xf0]  ;;  %v2613_v63 = vld [vmem:[#allocation4 + $0x364] sm:$0xf]  ;;  %v2564_v54 = vld [vmem:[#allocation4 + $0x1d4] sm:$0xf0] }
  0x4e   :  { %1149 = vmatpush.bf16.msrb.mxu1 %v1963_v2  ;;  %v2143_v0 = vor.u32 %v2581_v61, %v2140_v62  ;;  %v2268_v1 = vld [vmem:[#allocation4 + $0x370] sm:$0xf0]  ;;  %v2541_v5 = vld [vmem:[#allocation4 + $0x124] sm:$0xf]  ;;  %v2338_v58 = vld [vmem:[#allocation4 + $0x3e8] sm:$0xf] }
  0x4f   :  { %1163 = vmatpush.bf16.msrb.mxu2 %v2091_v13  ;;  %v2271_v2 = vor.u32 %v2613_v63, %v2268_v1  ;;  %v1852_v4 = vld [vmem:[#allocation4 + $0x30] sm:$0xf0]  ;;  %v2577_v9 = vld [vmem:[#allocation4 + $0x244] sm:$0xf]  ;;  %v2632_v61 = vld [vmem:[#allocation4 + $0x3f4] sm:$0xf0] }
  0x50   :  { %1177 = vmatpush.bf16.msrb.mxu3 %v2219_v14  ;;  %v2124_v10 = vld [vmem:[#allocation4 + $0x250] sm:$0xf0]  ;;  %v2609_v11 = vld [vmem:[#allocation4 + $0x344] sm:$0xf]  ;;  %v1922_v62 = vld [vmem:[#allocation4 + $0xa8] sm:$0xf] }
  0x51   :  { %1184 = vmatpush.bf16.msra.mxu0 %v1951_v3  ;;  %v2509_v3 = vld [vmem:[#allocation4 + $0x24] sm:$0xf]  ;;  %v2127_v12 = vor.u32 %v2577_v9, %v2124_v10  ;;  %v2252_v13 = vld [vmem:[#allocation4 + $0x350] sm:$0xf0]  ;;  %v2528_v63 = vld [vmem:[#allocation4 + $0xb4] sm:$0xf0]  ;;  %v2339_v9 = vor.u32 %v2632_v61, %v2338_v58 }
  0x52   :  { %1198 = vmatpush.bf16.msra.mxu1 %v2079_v7  ;;  %v1855_v6 = vor.u32 %v2509_v3, %v1852_v4  ;;  %v1980_v7 = vld [vmem:[#allocation4 + $0x130] sm:$0xf0]  ;;  %v2255_v14 = vor.u32 %v2609_v11, %v2252_v13  ;;  %v2605_v23 = vld [vmem:[#allocation4 + $0x324] sm:$0xf]  ;;  %v2050_v3 = vld [vmem:[#allocation4 + $0x1a8] sm:$0xf]  ;;  %v1923_v10 = vor.u32 %v2528_v63, %v1922_v62 }
  0x53   :  { %1212 = vmatpush.bf16.msra.mxu2 %v2207_v15  ;;  %v1983_v8 = vor.u32 %v2541_v5, %v1980_v7  ;;  %v2505_v15 = vld [vmem:[#allocation4 + $0x4] sm:$0xf]  ;;  %v1964_v19 = vld [vmem:[#allocation4 + $0x110] sm:$0xf0]  ;;  %v2560_v4 = vld [vmem:[#allocation4 + $0x1b4] sm:$0xf0] }
  0x54   :  { %1226 = vmatpush.bf16.msra.mxu3 %v2335_v17  ;;  %v2537_v17 = vld [vmem:[#allocation4 + $0x104] sm:$0xf]  ;;  %v2108_v22 = vld [vmem:[#allocation4 + $0x230] sm:$0xf0]  ;;  %v2194_v11 = vld [vmem:[#allocation4 + $0x2c8] sm:$0xf] }
  0x55   :  { %1185 = vmatpush.bf16.msra.mxu0 %v1935_v16  ;;  %v1836_v16 = vld [vmem:[#allocation4 + $0x10] sm:$0xf0]  ;;  %v1967_v20 = vor.u32 %v2537_v17, %v1964_v19  ;;  %v2601_v30 = vld [vmem:[#allocation4 + $0x304] sm:$0xf]  ;;  %v2322_v13 = vld [vmem:[#allocation4 + $0x3c8] sm:$0xf] }
  0x56   :  { %1199 = vmatpush.bf16.msra.mxu1 %v2063_v21  ;;  %v1839_v18 = vor.u32 %v2505_v15, %v1836_v16  ;;  %v2573_v21 = vld [vmem:[#allocation4 + $0x224] sm:$0xf]  ;;  %v2236_v24 = vld [vmem:[#allocation4 + $0x330] sm:$0xf0]  ;;  %v2051_v15 = vor.u32 %v2560_v4, %v2050_v3  ;;  %v2628_v16 = vld [vmem:[#allocation4 + $0x3d4] sm:$0xf0] }
  0x57   :  { %1213 = vmatpush.bf16.msra.mxu2 %v2191_v27  ;;  %v2111_v25 = vor.u32 %v2573_v21, %v2108_v22  ;;  %v2239_v26 = vor.u32 %v2605_v23, %v2236_v24  ;;  %v2569_v27 = vld [vmem:[#allocation4 + $0x204] sm:$0xf]  ;;  %v2220_v31 = vld [vmem:[#allocation4 + $0x310] sm:$0xf0]  ;;  %v1906_v17 = vld [vmem:[#allocation4 + $0x88] sm:$0xf]  ;;  %v2323_v22 = vor.u32 %v2628_v16, %v2322_v13 }
  0x58   :  { %1227 = vmatpush.bf16.msra.mxu3 %v2319_v29  ;;  %v2223_v32 = vor.u32 %v2601_v30, %v2220_v31  ;;  %v2034_v19 = vld [vmem:[#allocation4 + $0x188] sm:$0xf]  ;;  %v2520_v30 = vld [vmem:[#allocation4 + $0x74] sm:$0xf0] }
  0x59   :  { %1186 = vmatpush.bf16.msra.mxu0 %v1919_v28  ;;  %v2092_v28 = vld [vmem:[#allocation4 + $0x210] sm:$0xf0]  ;;  %v2178_v24 = vld [vmem:[#allocation4 + $0x2a8] sm:$0xf]  ;;  %v2544_v58 = vld [vmem:[#allocation4 + $0x134] sm:$0xf0] }
  0x5a   :  { %1200 = vmatpush.bf16.msra.mxu1 %v2047_v33  ;;  %v2095_v29 = vor.u32 %v2569_v27, %v2092_v28  ;;  %v2306_v27 = vld [vmem:[#allocation4 + $0x3a8] sm:$0xf]  ;;  %v2624_v28 = vld [vmem:[#allocation4 + $0x3b4] sm:$0xf0] }
  0x5b   :  { %1214 = vmatpush.bf16.msra.mxu2 %v2175_v39  ;;  %v2018_v31 = vld [vmem:[#allocation4 + $0x168] sm:$0xf]  ;;  %v2580_v62 = vld [vmem:[#allocation4 + $0x254] sm:$0xf0] }
  0x5c   :  { %1228 = vmatpush.bf16.msra.mxu3 %v2303_v41  ;;  %v2130_v61 = vld [vmem:[#allocation4 + $0x248] sm:$0xf]  ;;  %v2508_v4 = vld [vmem:[#allocation4 + $0x14] sm:$0xf0] }
  0x5d   :  { %1187 = vmatpush.bf16.msra.mxu0 %v1903_v40  ;;  %v2258_v63 = vld [vmem:[#allocation4 + $0x348] sm:$0xf]  ;;  %v2576_v16 = vld [vmem:[#allocation4 + $0x234] sm:$0xf0] }
  0x5e   :  { %1201 = vmatpush.bf16.msra.mxu1 %v2031_v42  ;;  %v2082_v42 = vld [vmem:[#allocation4 + $0x1e8] sm:$0xf] }
  0x5f   :  { %1215 = vmatpush.bf16.msra.mxu2 %v2159_v52  ;;  %v2083_v49 = vor.u32 %v2568_v43, %v2082_v42  ;;  %v2516_v42 = vld [vmem:[#allocation4 + $0x54] sm:$0xf0]  ;;  %v2002_v43 = vld [vmem:[#allocation4 + $0x148] sm:$0xf] }
  0x60   :  { %1229 = vmatpush.bf16.msra.mxu3 %v2287_v56  ;;  %v2210_v56 = vld [vmem:[#allocation4 + $0x2e8] sm:$0xf] }
  0x61   :  { %1188 = vmatpush.bf16.msra.mxu0 %v1887_v46  ;;  %v1842_v3 = vld [vmem:[#allocation4 + $0x8] sm:$0xf] }
  0x62   :  { %1202 = vmatpush.bf16.msra.mxu1 %v2015_v48 }
  0x63   :  { %1216 = vmatpush.bf16.msra.mxu2 %v2143_v0 }
  0x64   :  { %1230 = vmatpush.bf16.msra.mxu3 %v2271_v2 }
  0x65   :  { %1189 = vmatpush.bf16.msra.mxu0 %v1871_v57  ;;  %v2600_v57 = vld [vmem:[#allocation4 + $0x2f4] sm:$0xf0] }
  0x66   :  { %1203 = vmatpush.bf16.msra.mxu1 %v1999_v60  ;;  %v2067_v60 = vor.u32 %v2564_v54, %v2066_v53  ;;  %v2211_v7 = vor.u32 %v2600_v57, %v2210_v56  ;;  %v2274_v53 = vld [vmem:[#allocation4 + $0x368] sm:$0xf]  ;;  %v2616_v54 = vld [vmem:[#allocation4 + $0x374] sm:$0xf0] }
  0x67   :  { %1217 = vmatpush.bf16.msra.mxu2 %v2127_v12  ;;  %v2596_v12 = vld [vmem:[#allocation4 + $0x2d4] sm:$0xf0]  ;;  %v1986_v57 = vld [vmem:[#allocation4 + $0x128] sm:$0xf] }
  0x68   :  { %1231 = vmatpush.bf16.msra.mxu3 %v2255_v14  ;;  %v2195_v21 = vor.u32 %v2596_v12, %v2194_v11  ;;  %v2512_v56 = vld [vmem:[#allocation4 + $0x34] sm:$0xf0]  ;;  %v2566_v11 = vld [vmem:[#allocation4 + $0x1ec] sm:$0xf]  ;;  %v2084_v12 = vld [vmem:[#allocation4 + $0x1f8] sm:$0xf0] }
  0x69   :  { %1190 = vmatpush.bf16.msra.mxu0 %v1855_v6 }
  0x6a   :  { %1204 = vmatpush.bf16.msra.mxu1 %v1983_v8 }
  0x6b   :  { %1218 = vmatpush.bf16.msra.mxu2 %v2111_v25  ;;  %v2592_v25 = vld [vmem:[#allocation4 + $0x2b4] sm:$0xf0] }
  0x6c   :  { %1232 = vmatpush.bf16.msra.mxu3 %v2239_v26 }
  0x6d   :  { %1191 = vmatpush.bf16.msra.mxu0 %v1839_v18  ;;  %v2524_v18 = vld [vmem:[#allocation4 + $0x94] sm:$0xf0] }
  0x6e   :  { %1205 = vmatpush.bf16.msra.mxu1 %v1967_v20  ;;  %v2556_v20 = vld [vmem:[#allocation4 + $0x194] sm:$0xf0]  ;;  %v1907_v23 = vor.u32 %v2524_v18, %v1906_v17  ;;  %v1843_v17 = vor.u32 %v2508_v4, %v1842_v3  ;;  %v2518_v3 = vld [vmem:[#allocation4 + $0x6c] sm:$0xf]  ;;  %v1892_v4 = vld [vmem:[#allocation4 + $0x78] sm:$0xf0] }
  0x6f   :  { %1219 = vmatpush.bf16.msra.mxu2 %v2095_v29  ;;  %v2035_v26 = vor.u32 %v2556_v20, %v2034_v19  ;;  %v1890_v29 = vld [vmem:[#allocation4 + $0x68] sm:$0xf]  ;;  %v2608_v20 = vld [vmem:[#allocation4 + $0x334] sm:$0xf0] }
  0x70   :  { %1233 = vmatpush.bf16.msra.mxu3 %v2223_v32  ;;  %v2552_v32 = vld [vmem:[#allocation4 + $0x174] sm:$0xf0]  ;;  %v1891_v37 = vor.u32 %v2520_v30, %v1890_v29  ;;  %v2242_v19 = vld [vmem:[#allocation4 + $0x328] sm:$0xf] }
  0x71   :  { %v2019_v38 = vor.u32 %v2552_v32, %v2018_v31  ;;  %v2098_v29 = vld [vmem:[#allocation4 + $0x208] sm:$0xf]  ;;  %v2572_v30 = vld [vmem:[#allocation4 + $0x214] sm:$0xf0] }
  0x72   :  { %v2226_v31 = vld [vmem:[#allocation4 + $0x308] sm:$0xf]  ;;  %v2604_v32 = vld [vmem:[#allocation4 + $0x314] sm:$0xf0] }
  0xad   :  { %v279_v33 = vpop.f32.mrf.mxu0 }
  0xae   :  { %v293_v34 = vpop.f32.mrf.mxu1  ;;  %v338_v35 = vmax.f32 %v279_v33, 0.0  ;;  %v2179_v33 = vor.u32 %v2592_v25, %v2178_v24  ;;  %v1940_v25 = vld [vmem:[#allocation4 + $0xd8] sm:$0xf0] }
  0xaf   :  { %v339_v39 = vmax.f32 %v293_v34, 0.0  ;;  %v2307_v34 = vor.u32 %v2624_v28, %v2306_v27  ;;  %v2068_v27 = vld [vmem:[#allocation4 + $0x1d8] sm:$0xf0]  ;;  %v2243_v28 = vor.u32 %v2608_v20, %v2242_v19  ;;  %v2546_v19 = vld [vmem:[#allocation4 + $0x14c] sm:$0xf] }
  0xb0   :  { %v2004_v20 = vld [vmem:[#allocation4 + $0x158] sm:$0xf0] }
  0xb5   :  { %v307_v36 = vpop.f32.mrf.mxu2  ;;  %v281_v41 = vpop.f32.mrf.mxu0 }
  0xb6   :  { %v321_v40 = vpop.f32.mrf.mxu3  ;;  %v342_v44 = vmax.f32 %v281_v41, 0.0  ;;  %v295_v45 = vpop.f32.mrf.mxu1  ;;  %v340_v0 = vmax.f32 %v307_v36, 0.0  ;;  %v2588_v36 = vld [vmem:[#allocation4 + $0x294] sm:$0xf0]  ;;  %v1874_v41 = vld [vmem:[#allocation4 + $0x48] sm:$0xf] }
  0xb7   :  { %v343_v46 = vmax.f32 %v295_v45, 0.0  ;;  %v341_v5 = vmax.f32 %v321_v40, 0.0  ;;  %v2620_v40 = vld [vmem:[#allocation4 + $0x394] sm:$0xf0]  ;;  %v1875_v50 = vor.u32 %v2516_v42, %v1874_v41  ;;  %v1924_v41 = vld [vmem:[#allocation4 + $0xb8] sm:$0xf0] }
  0xb8   :  { %v2803_v48 = vpack.c.bf16 %v342_v44, %v338_v35  ;;  %v2162_v35 = vld [vmem:[#allocation4 + $0x288] sm:$0xf]  ;;  %v2548_v44 = vld [vmem:[#allocation4 + $0x154] sm:$0xf0]  ;;  %v2558_v42 = vld [vmem:[#allocation4 + $0x1ac] sm:$0xf] }
  0xb9   :  { %v2805_v52 = vpack.c.bf16 %v343_v46, %v339_v39  ;;  %v2290_v39 = vld [vmem:[#allocation4 + $0x388] sm:$0xf]  ;;  %v2163_v45 = vor.u32 %v2588_v36, %v2162_v35  ;;  %v2003_v51 = vor.u32 %v2548_v44, %v2002_v43  ;;  %v2052_v43 = vld [vmem:[#allocation4 + $0x1b8] sm:$0xf0]  ;;  %v2227_v44 = vor.u32 %v2604_v32, %v2226_v31  ;;  %v2542_v31 = vld [vmem:[#allocation4 + $0x12c] sm:$0xf] }
  0xba   :  { %1136 = vmatmul.bf16.vlgmr.msrb.gmra.mxu0 %v2803_v48  ;;  %v2291_v46 = vor.u32 %v2620_v40, %v2290_v39  ;;  %v2526_v39 = vld [vmem:[#allocation4 + $0xac] sm:$0xf]  ;;  %v2099_v40 = vor.u32 %v2572_v30, %v2098_v29  ;;  %v1860_v30 = vld [vmem:[#allocation4 + $0x38] sm:$0xf0] }
  0xbb   :  { %1150 = vmatmul.bf16.vlgmr.msrb.gmra.mxu1 %v2805_v52  ;;  %1240 = vmatpush.bf16.msrb.mxu0 %v1955_v47  ;;  %v2146_v47 = vld [vmem:[#allocation4 + $0x268] sm:$0xf]  ;;  %v2510_v29 = vld [vmem:[#allocation4 + $0x2c] sm:$0xf]  ;;  %v1988_v32 = vld [vmem:[#allocation4 + $0x138] sm:$0xf0] }
  0xbc   :  { %1254 = vmatpush.bf16.msrb.mxu1 %v2083_v49  ;;  %v2584_v49 = vld [vmem:[#allocation4 + $0x274] sm:$0xf0] }
  0xbd   :  { %v309_v59 = vpop.f32.mrf.mxu2 }
  0xbe   :  { %v344_v1 = vmax.f32 %v309_v59, 0.0  ;;  %v323_v2 = vpop.f32.mrf.mxu3  ;;  %v2147_v59 = vor.u32 %v2584_v49, %v2146_v47  ;;  %v2594_v47 = vld [vmem:[#allocation4 + $0x2cc] sm:$0xf]  ;;  %v2196_v49 = vld [vmem:[#allocation4 + $0x2d8] sm:$0xf0] }
  0xbf   :  { %v345_v6 = vmax.f32 %v323_v2, 0.0  ;;  %1241 = vmatpush.bf16.msrb.mxu0 %v1939_v55  ;;  %v1858_v55 = vld [vmem:[#allocation4 + $0x28] sm:$0xf]  ;;  %v2612_v2 = vld [vmem:[#allocation4 + $0x354] sm:$0xf0] }
  0xc0   :  { %v2809_v8 = vpack.c.bf16 %v344_v1, %v340_v0  ;;  %1255 = vmatpush.bf16.msrb.mxu1 %v2067_v60  ;;  %v2275_v60 = vor.u32 %v2616_v54, %v2274_v53  ;;  %v1859_v0 = vor.u32 %v2512_v56, %v1858_v55  ;;  %v1987_v1 = vor.u32 %v2544_v58, %v1986_v57  ;;  %v2626_v53 = vld [vmem:[#allocation4 + $0x3cc] sm:$0xf]  ;;  %v2324_v54 = vld [vmem:[#allocation4 + $0x3d8] sm:$0xf0] }
  0xc1   :  { %v2811_v14 = vpack.c.bf16 %v345_v6, %v341_v5  ;;  %v1970_v5 = vld [vmem:[#allocation4 + $0x108] sm:$0xf]  ;;  %v2540_v6 = vld [vmem:[#allocation4 + $0x114] sm:$0xf0]  ;;  %v2259_v13 = vor.u32 %v2612_v2, %v2258_v63  ;;  %v2522_v55 = vld [vmem:[#allocation4 + $0x8c] sm:$0xf] }
  0xc2   :  { %1164 = vmatmul.bf16.vlgmr.msrb.gmra.mxu2 %v2809_v8  ;;  %v1971_v18 = vor.u32 %v2540_v6, %v1970_v5  ;;  %v1908_v56 = vld [vmem:[#allocation4 + $0x98] sm:$0xf0]  ;;  %v2554_v57 = vld [vmem:[#allocation4 + $0x18c] sm:$0xf] }
  0xc3   :  { %1178 = vmatmul.bf16.vlgmr.msrb.gmra.mxu3 %v2811_v14  ;;  %1268 = vmatpush.bf16.msrb.mxu2 %v2211_v7  ;;  %v2534_v7 = vld [vmem:[#allocation4 + $0xec] sm:$0xf]  ;;  %v2036_v58 = vld [vmem:[#allocation4 + $0x198] sm:$0xf0]  ;;  %v1911_v63 = vor.u32 %v2522_v55, %v1908_v56 }
  0xc4   :  { %1282 = vmatpush.bf16.msrb.mxu3 %v2339_v9  ;;  %1242 = vmatpush.bf16.msrb.mxu0 %v1923_v10  ;;  %v2131_v9 = vor.u32 %v2580_v62, %v2130_v61  ;;  %v1956_v10 = vld [vmem:[#allocation4 + $0xf8] sm:$0xf0]  ;;  %v2590_v61 = vld [vmem:[#allocation4 + $0x2ac] sm:$0xf] }
  0xc5   :  { %1256 = vmatpush.bf16.msrb.mxu1 %v2051_v15  ;;  %v2114_v15 = vld [vmem:[#allocation4 + $0x228] sm:$0xf]  ;;  %v2180_v62 = vld [vmem:[#allocation4 + $0x2b8] sm:$0xf0]  ;;  %v2550_v5 = vld [vmem:[#allocation4 + $0x16c] sm:$0xf] }
  0xc6   :  { %v2115_v24 = vor.u32 %v2576_v16, %v2114_v15  ;;  %v2308_v2 = vld [vmem:[#allocation4 + $0x3b8] sm:$0xf0]  ;;  %v2618_v15 = vld [vmem:[#allocation4 + $0x38c] sm:$0xf] }
  0xc7   :  { %1269 = vmatpush.bf16.msrb.mxu2 %v2195_v21  ;;  %v1959_v21 = vor.u32 %v2534_v7, %v1956_v10  ;;  %v2020_v6 = vld [vmem:[#allocation4 + $0x178] sm:$0xf0]  ;;  %v2183_v7 = vor.u32 %v2590_v61, %v2180_v62  ;;  %v2586_v10 = vld [vmem:[#allocation4 + $0x28c] sm:$0xf] }
  0xc8   :  { %1283 = vmatpush.bf16.msrb.mxu3 %v2323_v22  ;;  %1243 = vmatpush.bf16.msrb.mxu0 %v1907_v23  ;;  %v2087_v22 = vor.u32 %v2566_v11, %v2084_v12  ;;  %v2530_v23 = vld [vmem:[#allocation4 + $0xcc] sm:$0xf]  ;;  %v2164_v11 = vld [vmem:[#allocation4 + $0x298] sm:$0xf0]  ;;  %v1895_v12 = vor.u32 %v2518_v3, %v1892_v4 }
  0xc9   :  { %1257 = vmatpush.bf16.msrb.mxu1 %v2035_v26  ;;  %v2562_v26 = vld [vmem:[#allocation4 + $0x1cc] sm:$0xf]  ;;  %v1943_v35 = vor.u32 %v2530_v23, %v1940_v25  ;;  %v2292_v16 = vld [vmem:[#allocation4 + $0x398] sm:$0xf0] }
  0xca   :  { %1192 = vmatmul.bf16.vlgmr.msra.gmra.mxu0 %v2803_v48  ;;  %v2071_v36 = vor.u32 %v2562_v26, %v2068_v27  ;;  %v2582_v23 = vld [vmem:[#allocation4 + $0x26c] sm:$0xf]  ;;  %v2007_v26 = vor.u32 %v2546_v19, %v2004_v20  ;;  %v2640_v55 = vld [vmem:[#allocation6 + $0x38] sm:$0xff]  ;;  %v2641_v20 = vld [vmem:[#allocation6 + $0x40] sm:$0xff] }
  0xcb   :  { %1270 = vmatpush.bf16.msrb.mxu2 %v2179_v33  ;;  %1206 = vmatmul.bf16.vlgmr.msra.gmra.mxu1 %v2805_v52  ;;  %v2598_v33 = vld [vmem:[#allocation4 + $0x2ec] sm:$0xf]  ;;  %v2228_v61 = vld [vmem:[#allocation4 + $0x318] sm:$0xf0] }
  0xcc   :  { %1284 = vmatpush.bf16.msrb.mxu3 %v2307_v34  ;;  %1244 = vmatpush.bf16.msrb.mxu0 %v1891_v37  ;;  %v2212_v34 = vld [vmem:[#allocation4 + $0x2f8] sm:$0xf0]  ;;  %v2630_v37 = vld [vmem:[#allocation4 + $0x3ec] sm:$0xf] }
  0xcd   :  { %1258 = vmatpush.bf16.msrb.mxu1 %v2019_v38  ;;  %v2340_v38 = vld [vmem:[#allocation4 + $0x3f8] sm:$0xf0]  ;;  %v2614_v27 = vld [vmem:[#allocation4 + $0x36c] sm:$0xf] }
  0xce   :  { %v2636_v3 = vld [vmem:[#allocation6 + $0x18] sm:$0xff] }
  0xcf   :  { %1271 = vmatpush.bf16.msrb.mxu2 %v2163_v45  ;;  %v2215_v45 = vor.u32 %v2598_v33, %v2212_v34  ;;  %v2648_v4 = vld [vmem:[#allocation6 + $0x78] sm:$0xff] }
  0xd0   :  { %1285 = vmatpush.bf16.msrb.mxu3 %v2291_v46  ;;  %1245 = vmatpush.bf16.msrb.mxu0 %v1875_v50  ;;  %v2343_v46 = vor.u32 %v2630_v37, %v2340_v38  ;;  %v1927_v50 = vor.u32 %v2526_v39, %v1924_v41  ;;  %v1863_v37 = vor.u32 %v2510_v29, %v1860_v30  ;;  %v2610_v39 = vld [vmem:[#allocation4 + $0x34c] sm:$0xf] }
  0xd1   :  { %1259 = vmatpush.bf16.msrb.mxu1 %v2003_v51  ;;  %v2055_v51 = vor.u32 %v2558_v42, %v2052_v43  ;;  %v1991_v38 = vor.u32 %v2542_v31, %v1988_v32  ;;  %v2506_v41 = vld [vmem:[#allocation4 + $0xc] sm:$0xf]  ;;  %v1844_v42 = vld [vmem:[#allocation4 + $0x18] sm:$0xf0]  ;;  %v2651_v31 = vld [vmem:[#allocation6 + $0x90] sm:$0xff] }
  0xd2   :  { %1220 = vmatmul.bf16.vlgmr.msra.gmra.mxu2 %v2809_v8  ;;  %v2538_v43 = vld [vmem:[#allocation4 + $0x10c] sm:$0xf] }
  0xd3   :  { %1234 = vmatmul.bf16.vlgmr.msra.gmra.mxu3 %v2811_v14  ;;  %1272 = vmatpush.bf16.msrb.mxu2 %v2147_v59  ;;  %v2199_v59 = vor.u32 %v2594_v47, %v2196_v49  ;;  %v2574_v47 = vld [vmem:[#allocation4 + $0x22c] sm:$0xf]  ;;  %v2116_v49 = vld [vmem:[#allocation4 + $0x238] sm:$0xf0] }
  0xd4   :  { %1286 = vmatpush.bf16.msrb.mxu3 %v2275_v60  ;;  %1246 = vmatpush.bf16.msrb.mxu0 %v1859_v0  ;;  %v2327_v60 = vor.u32 %v2626_v53, %v2324_v54  ;;  %v2039_v0 = vor.u32 %v2554_v57, %v2036_v58  ;;  %v2606_v53 = vld [vmem:[#allocation4 + $0x32c] sm:$0xf]  ;;  %v2244_v54 = vld [vmem:[#allocation4 + $0x338] sm:$0xf0]  ;;  %v2119_v56 = vor.u32 %v2574_v47, %v2116_v49 }
  0xd5   :  { %1260 = vmatpush.bf16.msrb.mxu1 %v1987_v1  ;;  %v2622_v1 = vld [vmem:[#allocation4 + $0x3ac] sm:$0xf]  ;;  %v2247_v57 = vor.u32 %v2606_v53, %v2244_v54 }
  0xd6   :  { %v2570_v58 = vld [vmem:[#allocation4 + $0x20c] sm:$0xf] }
  0xd7   :  { %1273 = vmatpush.bf16.msrb.mxu2 %v2131_v9  ;;  %v2311_v9 = vor.u32 %v2622_v1, %v2308_v2  ;;  %v2638_v1 = vld [vmem:[#allocation6 + $0x28] sm:$0xff]  ;;  %v2637_v2 = vld [vmem:[#allocation6 + $0x20] sm:$0xff] }
  0xd8   :  { %1287 = vmatpush.bf16.msrb.mxu3 %v2259_v13  ;;  %1247 = vmatpush.bf16.msrb.mxu0 %v1843_v17  ;;  %v2023_v13 = vor.u32 %v2550_v5, %v2020_v6  ;;  %v2514_v17 = vld [vmem:[#allocation4 + $0x4c] sm:$0xf]  ;;  %v2647_v5 = vld [vmem:[#allocation6 + $0x70] sm:$0xff] }
  0xd9   :  { %1261 = vmatpush.bf16.msrb.mxu1 %v1971_v18  ;;  %v1876_v18 = vld [vmem:[#allocation4 + $0x58] sm:$0xf0]  ;;  %v2646_v6 = vld [vmem:[#allocation6 + $0x68] sm:$0xff] }
  0xda   :  { %v1879_v25 = vor.u32 %v2514_v17, %v1876_v18  ;;  %v2654_v17 = vld [vmem:[#allocation6 + $0xa8] sm:$0xff] }
  0xdb   :  { %1274 = vmatpush.bf16.msrb.mxu2 %v2115_v24  ;;  %1248 = vmatmul.bf16.vlgmr.msrb.gmra.mxu0 %v2803_v48  ;;  %v2148_v24 = vld [vmem:[#allocation4 + $0x278] sm:$0xf0] }
  0xdc   :  { %1296 = vmatpush.bf16.msra.mxu0 %v1959_v21  ;;  %1288 = vmatpush.bf16.msrb.mxu3 %v2243_v28  ;;  %v2167_v21 = vor.u32 %v2586_v10, %v2164_v11  ;;  %v2276_v28 = vld [vmem:[#allocation4 + $0x378] sm:$0xf0]  ;;  %v2151_v33 = vor.u32 %v2582_v23, %v2148_v24 }
  0xdd   :  { %1310 = vmatpush.bf16.msra.mxu1 %v2087_v22  ;;  %v2295_v22 = vor.u32 %v2618_v15, %v2292_v16  ;;  %v2279_v34 = vor.u32 %v2614_v27, %v2276_v28  ;;  %v2830_v15 = vld [vmem:[%s2848_s3] sm:$0xf]  ;;  %v2642_v16 = vld [vmem:[#allocation6 + $0x48] sm:$0xff] }
  0xde   :  { %1262 = vmatmul.bf16.vlgmr.msrb.gmra.mxu1 %v2805_v52  ;;  %v480_v18 = vperm.slane %v2830_v15, 0 }
  0xdf   :  { %1275 = vmatpush.bf16.msrb.mxu2 %v2099_v40  ;;  %v2260_v40 = vld [vmem:[#allocation4 + $0x358] sm:$0xf0] }
  0xe0   :  { %1297 = vmatpush.bf16.msra.mxu0 %v1943_v35  ;;  %1289 = vmatpush.bf16.msrb.mxu3 %v2227_v44  ;;  %v2578_v35 = vld [vmem:[#allocation4 + $0x24c] sm:$0xf]  ;;  %v1972_v44 = vld [vmem:[#allocation4 + $0x118] sm:$0xf0] }
  0xe1   :  { %1311 = vmatpush.bf16.msra.mxu1 %v2071_v36  ;;  %v2132_v36 = vld [vmem:[#allocation4 + $0x258] sm:$0xf0] }
  0xe2   :  { %1276 = vmatmul.bf16.vlgmr.msrb.gmra.mxu2 %v2809_v8 }
  0xe3   :  { %1324 = vmatpush.bf16.msra.mxu2 %v2215_v45  ;;  %1290 = vmatmul.bf16.vlgmr.msrb.gmra.mxu3 %v2811_v14  ;;  %v2135_v45 = vor.u32 %v2578_v35, %v2132_v36 }
  0xe4   :  { %1338 = vmatpush.bf16.msra.mxu3 %v2343_v46  ;;  %1298 = vmatpush.bf16.msra.mxu0 %v1927_v50  ;;  %v2263_v46 = vor.u32 %v2610_v39, %v2260_v40  ;;  %v1847_v50 = vor.u32 %v2506_v41, %v1844_v42  ;;  %v481_v39 = vperm.slane %v2830_v15, 1 }
  0xe5   :  { %1312 = vmatpush.bf16.msra.mxu1 %v2055_v51  ;;  %v1975_v51 = vor.u32 %v2538_v43, %v1972_v44  ;;  %v2649_v44 = vld [vmem:[#allocation6 + $0x80] sm:$0xff] }
  0xe7   :  { %1325 = vmatpush.bf16.msra.mxu2 %v2199_v59  ;;  %v2100_v59 = vld [vmem:[#allocation4 + $0x218] sm:$0xf0] }
  0xe8   :  { %1339 = vmatpush.bf16.msra.mxu3 %v2327_v60  ;;  %1299 = vmatpush.bf16.msra.mxu0 %v1911_v63  ;;  %v2602_v60 = vld [vmem:[#allocation4 + $0x30c] sm:$0xf]  ;;  %v2103_v62 = vor.u32 %v2570_v58, %v2100_v59 }
  0xe9   :  { %1313 = vmatpush.bf16.msra.mxu1 %v2039_v0  ;;  %v2231_v63 = vor.u32 %v2602_v60, %v2228_v61  ;;  %v2639_v0 = vld [vmem:[#allocation6 + $0x30] sm:$0xff] }
  0xeb   :  { %1326 = vmatpush.bf16.msra.mxu2 %v2183_v7  ;;  %v2644_v7 = vld [vmem:[#allocation6 + $0x58] sm:$0xff] }
  0xec   :  { %1340 = vmatpush.bf16.msra.mxu3 %v2311_v9  ;;  %1300 = vmatpush.bf16.msra.mxu0 %v1895_v12  ;;  %v2656_v9 = vld [vmem:[#allocation6 + $0xb8] sm:$0xff]  ;;  %v2643_v12 = vld [vmem:[#allocation6 + $0x50] sm:$0xff] }
  0xed   :  { %1314 = vmatpush.bf16.msra.mxu1 %v2023_v13  ;;  %v2655_v13 = vld [vmem:[#allocation6 + $0xb0] sm:$0xff] }
  0xef   :  { %1327 = vmatpush.bf16.msra.mxu2 %v2167_v21  ;;  %v2653_v21 = vld [vmem:[#allocation6 + $0xa0] sm:$0xff] }
  0xf0   :  { %1341 = vmatpush.bf16.msra.mxu3 %v2295_v22  ;;  %1301 = vmatpush.bf16.msra.mxu0 %v1879_v25 }
  0xf1   :  { %1315 = vmatpush.bf16.msra.mxu1 %v2007_v26  ;;  %v2652_v26 = vld [vmem:[#allocation6 + $0x98] sm:$0xff] }
  0xf3   :  { %1328 = vmatpush.bf16.msra.mxu2 %v2151_v33 }
  0xf4   :  { %1342 = vmatpush.bf16.msra.mxu3 %v2279_v34  ;;  %1302 = vmatpush.bf16.msra.mxu0 %v1863_v37 }
  0xf5   :  { %1316 = vmatpush.bf16.msra.mxu1 %v1991_v38  ;;  %v2650_v38 = vld [vmem:[#allocation6 + $0x88] sm:$0xff] }
  0xf7   :  { %1329 = vmatpush.bf16.msra.mxu2 %v2135_v45  ;;  %v2664_v45 = vld [vmem:[#allocation6 + $0xf8] sm:$0xff] }
  0xf8   :  { %1343 = vmatpush.bf16.msra.mxu3 %v2263_v46  ;;  %1303 = vmatpush.bf16.msra.mxu0 %v1847_v50 }
  0xf9   :  { %1317 = vmatpush.bf16.msra.mxu1 %v1975_v51  ;;  %v2663_v51 = vld [vmem:[#allocation6 + $0xf0] sm:$0xff] }
  0xfb   :  { %1330 = vmatpush.bf16.msra.mxu2 %v2119_v56  ;;  %1304 = vmatmul.bf16.vlgmr.msra.gmra.mxu0 %v2803_v48  ;;  %v2635_v48 = vld [vmem:[#allocation6 + $0x10] sm:$0xff]  ;;  %v2662_v56 = vld [vmem:[#allocation6 + $0xe8] sm:$0xff] }
  0xfc   :  { %1636 = vmatpush.bf16.msrb.mxu0 %v2640_v55  ;;  %1344 = vmatpush.bf16.msra.mxu3 %v2247_v57 }
  0xfd   :  { %1318 = vmatmul.bf16.vlgmr.msra.gmra.mxu1 %v2805_v52  ;;  %v2634_v52 = vld [vmem:[#allocation6 + $0x8] sm:$0xff] }
  0xfe   :  { %1650 = vmatpush.bf16.msrb.mxu1 %v2648_v4 }
  0xff   :  { %1331 = vmatpush.bf16.msra.mxu2 %v2103_v62 }
 0x100   :  { %1345 = vmatpush.bf16.msra.mxu3 %v2231_v63  ;;  %1637 = vmatpush.bf16.msrb.mxu0 %v2639_v0  ;;  %v2661_v0 = vld [vmem:[#allocation6 + $0xe0] sm:$0xff] }
 0x102   :  { %1332 = vmatmul.bf16.vlgmr.msra.gmra.mxu2 %v2809_v8  ;;  %1651 = vmatpush.bf16.msrb.mxu1 %v2647_v5  ;;  %v2633_v8 = vld [vmem:[#allocation6] sm:$0xff]  ;;  %v2660_v5 = vld [vmem:[#allocation6 + $0xd8] sm:$0xff] }
 0x103   :  { %1346 = vmatmul.bf16.vlgmr.msra.gmra.mxu3 %v2811_v14  ;;  %v2645_v14 = vld [vmem:[#allocation6 + $0x60] sm:$0xff]  ;;  %1664 = vmatpush.bf16.msrb.mxu2 %v2656_v9  ;;  %v2659_v9 = vld [vmem:[#allocation6 + $0xd0] sm:$0xff] }
 0x104   :  { %1638 = vmatpush.bf16.msrb.mxu0 %v2638_v1  ;;  %1678 = vmatpush.bf16.msrb.mxu3 %v2664_v45 }
 0x106   :  { %1652 = vmatpush.bf16.msrb.mxu1 %v2646_v6 }
 0x107   :  { %1665 = vmatpush.bf16.msrb.mxu2 %v2655_v13  ;;  %v2658_v13 = vld [vmem:[#allocation6 + $0xc8] sm:$0xff] }
 0x108   :  { %1639 = vmatpush.bf16.msrb.mxu0 %v2637_v2  ;;  %1679 = vmatpush.bf16.msrb.mxu3 %v2663_v51  ;;  %v482_v2 = vperm.slane %v2830_v15, 2 }
 0x10a   :  { %1653 = vmatpush.bf16.msrb.mxu1 %v2645_v14 }
 0x10b   :  { %1666 = vmatpush.bf16.msrb.mxu2 %v2654_v17 }
 0x10c   :  { %1640 = vmatpush.bf16.msrb.mxu0 %v2636_v3  ;;  %1680 = vmatpush.bf16.msrb.mxu3 %v2662_v56 }
 0x10e   :  { %1654 = vmatpush.bf16.msrb.mxu1 %v2644_v7 }
 0x10f   :  { %1667 = vmatpush.bf16.msrb.mxu2 %v2653_v21  ;;  %v2657_v21 = vld [vmem:[#allocation6 + $0xc0] sm:$0xff] }
 0x110   :  { %1641 = vmatpush.bf16.msrb.mxu0 %v2635_v48  ;;  %1681 = vmatpush.bf16.msrb.mxu3 %v2661_v0 }
 0x112   :  { %1655 = vmatpush.bf16.msrb.mxu1 %v2643_v12 }
 0x113   :  { %1668 = vmatpush.bf16.msrb.mxu2 %v2652_v26 }
 0x114   :  { %1642 = vmatpush.bf16.msrb.mxu0 %v2634_v52  ;;  %1682 = vmatpush.bf16.msrb.mxu3 %v2660_v5 }
 0x116   :  { %1656 = vmatpush.bf16.msrb.mxu1 %v2642_v16 }
 0x117   :  { %1669 = vmatpush.bf16.msrb.mxu2 %v2651_v31 }
 0x118   :  { %1643 = vmatpush.bf16.msrb.mxu0 %v2633_v8  ;;  %1683 = vmatpush.bf16.msrb.mxu3 %v2659_v9 }
 0x11a   :  { %1657 = vmatpush.bf16.msrb.mxu1 %v2641_v20 }
 0x11b   :  { %1670 = vmatpush.bf16.msrb.mxu2 %v2650_v38 }
 0x11c   :  { %1684 = vmatpush.bf16.msrb.mxu3 %v2658_v13 }
 0x11f   :  { %1671 = vmatpush.bf16.msrb.mxu2 %v2649_v44 }
 0x120   :  { %1685 = vmatpush.bf16.msrb.mxu3 %v2657_v21 }
 0x137   :  { %v1137_v10 = vpop.f32.mrf.mxu0 }
 0x138   :  { %v1151_v11 = vpop.f32.mrf.mxu1  ;;  %v1138_v22 = vadd.f32 %v1137_v10, %v480_v18 }
 0x13a   :  { %v1152_v27 = vadd.f32 %v1151_v11, %v1138_v22 }
 0x13f   :  { %v1139_v19 = vpop.f32.mrf.mxu0 }
 0x140   :  { %v1153_v23 = vpop.f32.mrf.mxu1  ;;  %v1140_v28 = vadd.f32 %v1139_v19, %v480_v18 }
 0x142   :  { %v1154_v32 = vadd.f32 %v1153_v23, %v1140_v28  ;;  %v483_v28 = vperm.slane %v2830_v15, 3 }
 0x145   :  { %v1165_v24 = vpop.f32.mrf.mxu2 }
 0x146   :  { %v1179_v25 = vpop.f32.mrf.mxu3  ;;  %v1166_v30 = vadd.f32 %v1165_v24, %v1152_v27 }
 0x147   :  { %v1193_v29 = vpop.f32.mrf.mxu0 }
 0x148   :  { %v1180_v34 = vadd.f32 %v1179_v25, %v1166_v30  ;;  %v1207_v35 = vpop.f32.mrf.mxu1  ;;  %v1194_v46 = vadd.f32 %v1193_v29, %v481_v39 }
 0x14a   :  { %v1364_v42 = vmax.f32 %v1180_v34, 0.0  ;;  %v1208_v53 = vadd.f32 %v1207_v35, %v1194_v46 }
 0x14d   :  { %v1167_v33 = vpop.f32.mrf.mxu2 }
 0x14e   :  { %v1168_v36 = vadd.f32 %v1167_v33, %v1154_v32  ;;  %v1181_v37 = vpop.f32.mrf.mxu3 }
 0x14f   :  { %v1195_v41 = vpop.f32.mrf.mxu0 }
 0x150   :  { %v1182_v40 = vadd.f32 %v1181_v37, %v1168_v36  ;;  %v1196_v54 = vadd.f32 %v1195_v41, %v481_v39  ;;  %v1209_v55 = vpop.f32.mrf.mxu1 }
 0x152   :  { %v1368_v43 = vmax.f32 %v1182_v40, 0.0  ;;  %v1210_v59 = vadd.f32 %v1209_v55, %v1196_v54 }
 0x154   :  { %v1372_v47 = vpack.c.bf16 %v1368_v43, %v1364_v42 }
 0x155   :  { %v1221_v49 = vpop.f32.mrf.mxu2 }
 0x156   :  { %v1235_v50 = vpop.f32.mrf.mxu3  ;;  %1644 = vmatmul.bf16.vlgmr.msrb.gmra.mxu0 %v1372_v47  ;;  %v1222_v57 = vadd.f32 %v1221_v49, %v1208_v53  ;;  %v2672_v47 = vld [vmem:[%s2850_s5] ss:$0 sm:$0xff] }
 0x158   :  { %v1249_v58 = vpop.f32.mrf.mxu0  ;;  %v1236_v61 = vadd.f32 %v1235_v50, %v1222_v57 }
 0x159   :  { %v1250_v6 = vadd.f32 %v1249_v58, %v482_v2 }
 0x15a   :  { %v1365_v3 = vmax.f32 %v1236_v61, 0.0 }
 0x15b   :  { %v1263_v4 = vpop.f32.mrf.mxu1 }
 0x15c   :  { %v1264_v10 = vadd.f32 %v1263_v4, %v1250_v6 }
 0x15d   :  { %v1223_v60 = vpop.f32.mrf.mxu2 }
 0x15e   :  { %v1224_v62 = vadd.f32 %v1223_v60, %v1210_v59  ;;  %v1237_v63 = vpop.f32.mrf.mxu3 }
 0x160   :  { %v1238_v1 = vadd.f32 %v1237_v63, %v1224_v62  ;;  %v1251_v8 = vpop.f32.mrf.mxu0 }
 0x161   :  { %v1252_v11 = vadd.f32 %v1251_v8, %v482_v2 }
 0x162   :  { %v1369_v48 = vmax.f32 %v1238_v1, 0.0 }
 0x163   :  { %v1265_v16 = vpop.f32.mrf.mxu1 }
 0x164   :  { %v1373_v52 = vpack.c.bf16 %v1369_v48, %v1365_v3  ;;  %v1266_v17 = vadd.f32 %v1265_v16, %v1252_v11 }
 0x165   :  { %v1277_v14 = vpop.f32.mrf.mxu2 }
 0x166   :  { %v1291_v7 = vpop.f32.mrf.mxu3  ;;  %1658 = vmatmul.bf16.vlgmr.msrb.gmra.mxu1 %v1373_v52  ;;  %v1278_v12 = vadd.f32 %v1277_v14, %v1264_v10 }
 0x168   :  { %v1292_v19 = vadd.f32 %v1291_v7, %v1278_v12 }
 0x16a   :  { %v1366_v24 = vmax.f32 %v1292_v19, 0.0 }
 0x16d   :  { %v1279_v18 = vpop.f32.mrf.mxu2 }
 0x16e   :  { %v1280_v20 = vadd.f32 %v1279_v18, %v1266_v17  ;;  %v1293_v22 = vpop.f32.mrf.mxu3 }
 0x170   :  { %v1294_v23 = vadd.f32 %v1293_v22, %v1280_v20 }
 0x172   :  { %v1370_v25 = vmax.f32 %v1294_v23, 0.0 }
 0x174   :  { %v1374_v26 = vpack.c.bf16 %v1370_v25, %v1366_v24 }
 0x176   :  { %1672 = vmatmul.bf16.vlgmr.msrb.gmra.mxu2 %v1374_v26 }
 0x178   :  { %v1305_v27 = vpop.f32.mrf.mxu0 }
 0x179   :  { %v1306_v30 = vadd.f32 %v1305_v27, %v483_v28 }
 0x17a   :  { %v1319_v29 = vpop.f32.mrf.mxu1 }
 0x17b   :  { %v1320_v34 = vadd.f32 %v1319_v29, %v1306_v30 }
 0x180   :  { %v1307_v31 = vpop.f32.mrf.mxu0 }
 0x181   :  { %v1308_v35 = vadd.f32 %v1307_v31, %v483_v28 }
 0x182   :  { %v1321_v37 = vpop.f32.mrf.mxu1 }
 0x183   :  { %v1322_v38 = vadd.f32 %v1321_v37, %v1308_v35 }
 0x185   :  { %v1333_v32 = vpop.f32.mrf.mxu2 }
 0x186   :  { %v1347_v33 = vpop.f32.mrf.mxu3  ;;  %v1334_v36 = vadd.f32 %v1333_v32, %v1320_v34 }
 0x188   :  { %v1348_v40 = vadd.f32 %v1347_v33, %v1334_v36 }
 0x18a   :  { %v1367_v44 = vmax.f32 %v1348_v40, 0.0 }
 0x18d   :  { %v1335_v39 = vpop.f32.mrf.mxu2 }
 0x18e   :  { %v1336_v41 = vadd.f32 %v1335_v39, %v1322_v38  ;;  %v1349_v42 = vpop.f32.mrf.mxu3 }
 0x190   :  { %v1350_v43 = vadd.f32 %v1349_v42, %v1336_v41 }
 0x192   :  { %v1371_v45 = vmax.f32 %v1350_v43, 0.0 }
 0x194   :  { %v1375_v46 = vpack.c.bf16 %v1371_v45, %v1367_v44 }
 0x196   :  { %1686 = vmatmul.bf16.vlgmr.msrb.gmra.mxu3 %v1375_v46 }
 0x1d3   :  { %v1645_v15 = vpop.f32.mrf.mxu0 }
 0x1d4   :  { %v1646_v51 = vadd.f32 %v2672_v47, %v1645_v15 }
 0x1db   :  { %v1647_v55 = vpop.f32.mrf.mxu0 }
 0x1dc   :  { %v1648_v59 = vadd.f32 %v2672_v47, %v1647_v55 }
 0x1e3   :  { %v1659_v49 = vpop.f32.mrf.mxu1 }
 0x1e4   :  { %v1660_v53 = vadd.f32 %v1659_v49, %v1646_v51 }
 0x1eb   :  { %v1661_v58 = vpop.f32.mrf.mxu1 }
 0x1ec   :  { %v1662_v61 = vadd.f32 %v1661_v58, %v1648_v59 }
 0x1f9   :  { %v1673_v50 = vpop.f32.mrf.mxu2 }
 0x1fa   :  { %v1674_v54 = vadd.f32 %v1673_v50, %v1660_v53 }
 0x201   :  { %v1675_v60 = vpop.f32.mrf.mxu2 }
 0x202   :  { %v1676_v62 = vadd.f32 %v1675_v60, %v1662_v61 }
 0x219   :  { %v1687_v56 = vpop.f32.mrf.mxu3 }
 0x21a   :  { %v1688_v57 = vadd.f32 %v1687_v56, %v1674_v54 }
 0x21c   :  { %1692 = vst [vmem:[%s2851_s6] sm:$0xff] %v1688_v57 }
 0x221   :  { %v1689_v63 = vpop.f32.mrf.mxu3 }
 0x222   :  { %v1690_v0 = vadd.f32 %v1689_v63, %v1676_v62 }
 0x224   :  { %1693 = vst [vmem:[%s2851_s6 + $0x8] sm:$0xff] %v1690_v0 }
 0x225   :  { %1698 = vsyncpa [#allocation3], 1 }
 0x226   :  { %1699 = vsyncpa [#allocation5], 1 }

</bundles_post_ra>
